<compile_context>
chip_gen: v7x
topology: tpu7x:2x2x1
jax: 0.10.0
libtpu: 0.0.40
codegen_flags: <defaults>
</compile_context>

<pallas_src>
import functools

import jax
import jax.numpy as jnp
from jax.experimental import pallas as pl
from jax.experimental.pallas import tpu as pltpu


# --------------------------------------------------------------------------
# Small demo config (synthetic weights; hidden chosen lane-dense = 128).
# --------------------------------------------------------------------------
CFG = dict(vocab=128, hidden=128, heads=2, layers=2, intermediate=512,
           max_pos=64, type_vocab=2)


# --------------------------------------------------------------------------
# In-kernel helpers (pure functions of traced values).
# --------------------------------------------------------------------------
def _layernorm(x, gamma, beta, eps=1e-12):
    mean = jnp.mean(x, axis=-1, keepdims=True)
    var = jnp.mean(jnp.square(x - mean), axis=-1, keepdims=True)
    return (x - mean) * jax.lax.rsqrt(var + eps) * gamma + beta


def _gelu_tanh(x):
    # TODO(synk): HF BERT uses exact erf-GELU; tanh approximation used here
    # (EUP-friendly); outputs differ slightly from the erf reference.
    return 0.5 * x * (1.0 + jnp.tanh(0.7978845608028654 *
                                     (x + 0.044715 * x * x * x)))


# --------------------------------------------------------------------------
# Fused encoder + pooler kernel.  grid = (batch_blocks, num_layers).
# --------------------------------------------------------------------------
def _encoder_kernel(x0_hbm, bias_ref,
                    wqkv_ref, bqkv_ref, wo_ref, bo_ref, g1_ref, bt1_ref,
                    w1_ref, b1_ref, w2_ref, b2_ref, g2_ref, bt2_ref,
                    wp_ref, bp_ref,
                    o_ref,
                    state_ref, ctx_ref,
                    *, Bb, S, nH, Dh, H, L, scale):
    bi = pl.program_id(0)           # batch block (parallel axis; v7x: per-TC)
    layer = pl.program_id(1)        # transformer layer (sequential carry)
    Mb = Bb * S

    @pl.when(layer == 0)
    def _init():
        # Pull this block's rows of the (already embedding-LayerNormed) input
        # from HBM into the VMEM-resident activation state.  Done once per
        # batch block instead of keeping x0 double-buffered for all L steps.
        row0 = pl.multiple_of(bi * Mb, Mb)
        pltpu.sync_copy(x0_hbm.at[pl.ds(row0, Mb), :], state_ref)

    x = state_ref[...]                                   # (Mb, H) f32
    x_bf = x.astype(jnp.bfloat16)

    # ---- fused QKV projection (bf16 MXU, f32 accumulate) -----------------
    qkv = jnp.dot(x_bf, wqkv_ref[...],
                  preferred_element_type=jnp.float32) + bqkv_ref[...]  # (Mb, 3H)
    q = (qkv[:, :H] * scale).astype(jnp.bfloat16)        # fold 1/sqrt(Dh) into q
    k = qkv[:, H:2 * H].astype(jnp.bfloat16)
    v = qkv[:, 2 * H:].astype(jnp.bfloat16)

    bias = bias_ref[...]                                 # (Bb, 1, S) additive mask

    # ---- multi-head masked attention --------------------------------------
    # Each head's context is written directly into the ctx VMEM scratch slice
    # (no lane-axis concat, temporaries die per head).
    # TODO(synk): at nH=12 replace this unrolled loop with a single head-major
    # layout transform + batched einsum (or a head grid axis).
    for h in range(nH):
        sl = slice(h * Dh, (h + 1) * Dh)
        qh = q[:, sl].reshape(Bb, S, Dh)
        kh = k[:, sl].reshape(Bb, S, Dh)
        vh = v[:, sl].reshape(Bb, S, Dh)
        s = jnp.einsum("bqd,bkd->bqk", qh, kh,
                       preferred_element_type=jnp.float32) + bias       # (Bb,S,S)
        s = s - jnp.max(s, axis=-1, keepdims=True)
        p = jnp.exp(s)
        p = p * pl.reciprocal(jnp.sum(p, axis=-1, keepdims=True),
                              approx=True)               # EUP, off the VALU
        ctxh = jnp.einsum("bqk,bkd->bqd", p.astype(jnp.bfloat16), vh,
                          preferred_element_type=jnp.float32)           # (Bb,S,Dh)
        ctx_ref[:, sl] = ctxh.reshape(Mb, Dh)

    # ---- attention output projection + add & LayerNorm --------------------
    attn_out = jnp.dot(ctx_ref[...].astype(jnp.bfloat16), wo_ref[...],
                       preferred_element_type=jnp.float32) + bo_ref[...]
    x1 = _layernorm(attn_out + x, g1_ref[...], bt1_ref[...])

    # ---- FFN (GELU) + add & LayerNorm --------------------------------------
    ff = jnp.dot(x1.astype(jnp.bfloat16), w1_ref[...],
                 preferred_element_type=jnp.float32) + b1_ref[...]
    # Cast straight back to bf16: matmul-2 consumes bf16 anyway and the (Mb, I)
    # f32 intermediate is never held live.
    ff = _gelu_tanh(ff).astype(jnp.bfloat16)
    ff = jnp.dot(ff, w2_ref[...],
                 preferred_element_type=jnp.float32) + b2_ref[...]
    x2 = _layernorm(ff + x1, g2_ref[...], bt2_ref[...])
    state_ref[...] = x2                                  # carry to next layer

    # ---- pooler on the last layer: tanh(Dense(CLS)) ------------------------
    @pl.when(layer == L - 1)
    def _finalize():
        cls = x2.reshape(Bb, S, H)[:, 0, :]              # (Bb, H) CLS rows
        pooled = jnp.tanh(
            jnp.dot(cls.astype(jnp.bfloat16), wp_ref[...],
                    preferred_element_type=jnp.float32) + bp_ref[...])
        o_ref[...] = pooled


# --------------------------------------------------------------------------
# Parameters (synthetic, deterministic) — per-layer weights stacked on axis 0.
# --------------------------------------------------------------------------
def init_params(key, cfg):
    H, I, L = cfg["hidden"], cfg["intermediate"], cfg["layers"]

    def nrm(k, shape, dtype=jnp.float32):
        return (0.02 * jax.random.normal(k, shape, dtype=jnp.float32)).astype(dtype)

    ks = iter(jax.random.split(key, 12))
    return dict(
        word_emb=nrm(next(ks), (cfg["vocab"], H)),
        pos_emb=nrm(next(ks), (cfg["max_pos"], H)),
        type_emb=nrm(next(ks), (cfg["type_vocab"], H)),
        emb_ln_g=jnp.ones((1, H), jnp.float32),
        emb_ln_b=jnp.zeros((1, H), jnp.float32),
        # transformer layers (stacked along a leading L axis)
        w_qkv=nrm(next(ks), (L, H, 3 * H), jnp.bfloat16),
        b_qkv=jnp.zeros((L, 1, 3 * H), jnp.float32),
        wo=nrm(next(ks), (L, H, H), jnp.bfloat16),
        bo=jnp.zeros((L, 1, H), jnp.float32),
        ln1_g=jnp.ones((L, 1, H), jnp.float32),
        ln1_b=jnp.zeros((L, 1, H), jnp.float32),
        w1=nrm(next(ks), (L, H, I), jnp.bfloat16),
        b1=jnp.zeros((L, 1, I), jnp.float32),
        w2=nrm(next(ks), (L, I, H), jnp.bfloat16),
        b2=jnp.zeros((L, 1, H), jnp.float32),
        ln2_g=jnp.ones((L, 1, H), jnp.float32),
        ln2_b=jnp.zeros((L, 1, H), jnp.float32),
        # pooler
        wp=nrm(next(ks), (H, H), jnp.bfloat16),
        bp=jnp.zeros((1, H), jnp.float32),
    )


# --------------------------------------------------------------------------
# Forward: embedding gather + embedding LayerNorm in JAX glue, everything else
# in the fused kernel.
# --------------------------------------------------------------------------
def bert_pooled_forward(params, input_ids, attention_mask, cfg=CFG,
                        n_batch_blocks=None):
    B, S = input_ids.shape
    H, nH, L, I = cfg["hidden"], cfg["heads"], cfg["layers"], cfg["intermediate"]
    Dh = H // nH
    M = B * S

    # Leading "parallel" grid axis: one batch block per TensorCore on v7x
    # (2 TCs/chip); on single-TC chips it just serializes.
    if n_batch_blocks is None:
        n_batch_blocks = 2 if (B % 2 == 0) else 1
    NB = n_batch_blocks
    assert B % NB == 0
    Bb = B // NB
    Mb = Bb * S

    # Embedding sum + LayerNorm in glue (gather has no clean Pallas equivalent;
    # doing the LN here means x0 / emb-LN params never sit in kernel VMEM).
    emb = (jnp.take(params["word_emb"], input_ids, axis=0)
           + params["pos_emb"][None, :S, :]
           + params["type_emb"][0][None, None, :])   # TODO(synk): token_type_ids fixed to 0
    mean = jnp.mean(emb, axis=-1, keepdims=True)
    var = jnp.mean(jnp.square(emb - mean), axis=-1, keepdims=True)
    x0 = ((emb - mean) * jax.lax.rsqrt(var + 1e-12)
          * params["emb_ln_g"][0] + params["emb_ln_b"][0])
    x0 = x0.reshape(M, H).astype(jnp.float32)

    # Additive attention-mask bias: 0 keep, -10000 masked (broadcast over q).
    mask_bias = ((1.0 - attention_mask.astype(jnp.float32)) * -10000.0
                 ).reshape(B, 1, S)

    def per_layer(shape2d):   # one layer's slice per grid step, squeezed L dim
        return pl.BlockSpec((pl.Squeezed(),) + shape2d, lambda bi, l: (l, 0, 0))

    def resident(shape2d):    # constant over the whole grid
        return pl.BlockSpec(shape2d, lambda bi, l: (0, 0))

    kernel = functools.partial(
        _encoder_kernel, Bb=Bb, S=S, nH=nH, Dh=Dh, H=H, L=L,
        scale=1.0 / (Dh ** 0.5))

    # VMEM budget: double-buffered streamed layer params + activation scratch +
    # largest in-flight f32 temporaries, plus headroom.
    layer_w = 2 * (H * 3 * H + H * H + H * I + I * H)        # bf16 weights / layer
    layer_p = 4 * (3 * H + 2 * H + I + 4 * H)                # f32 biases + LN / layer
    act = 8 * Mb * H                                         # state f32 + ctx f32
    temps = 4 * Mb * (3 * H + I + 4 * H) + 4 * nH * Bb * S * S
    vmem_limit = int(min(max(2 * (layer_w + layer_p) + act + temps + (8 << 20),
                             32 << 20), 120 << 20))

    pooled = pl.pallas_call(
        kernel,
        out_shape=jax.ShapeDtypeStruct((NB, Bb, H), jnp.float32),
        grid_spec=pltpu.PrefetchScalarGridSpec(
            num_scalar_prefetch=0,
            grid=(NB, L),
            in_specs=[
                pl.BlockSpec(memory_space=pl.ANY),                 # x0 stays in HBM
                pl.BlockSpec((Bb, 1, S), lambda bi, l: (bi, 0, 0)),  # mask bias
                per_layer((H, 3 * H)),   # w_qkv
                per_layer((1, 3 * H)),   # b_qkv
                per_layer((H, H)),       # wo
                per_layer((1, H)),       # bo
                per_layer((1, H)),       # ln1_g
                per_layer((1, H)),       # ln1_b
                per_layer((H, I)),       # w1
                per_layer((1, I)),       # b1
                per_layer((I, H)),       # w2
                per_layer((1, H)),       # b2
                per_layer((1, H)),       # ln2_g
                per_layer((1, H)),       # ln2_b
                resident((H, H)),        # wp (pooler)
                resident((1, H)),        # bp (pooler)
            ],
            out_specs=pl.BlockSpec((pl.Squeezed(), Bb, H),
                                   lambda bi, l: (bi, 0, 0)),
            scratch_shapes=[
                pltpu.VMEM((Mb, H), jnp.float32),   # activation state (carried)
                pltpu.VMEM((Mb, H), jnp.float32),   # attention context
            ]),
        compiler_params=pltpu.CompilerParams(
            dimension_semantics=("parallel", "arbitrary"),
            vmem_limit_bytes=vmem_limit),
    )(x0, mask_bias,
      params["w_qkv"], params["b_qkv"], params["wo"], params["bo"],
      params["ln1_g"], params["ln1_b"],
      params["w1"], params["b1"], params["w2"], params["b2"],
      params["ln2_g"], params["ln2_b"],
      params["wp"], params["bp"])
    return pooled.reshape(B, H)


@jax.jit
def forward(params, input_ids, attention_mask):
    return bert_pooled_forward(params, input_ids, attention_mask, CFG)


# --------------------------------------------------------------------------

if __name__ == "__main__":
    key = jax.random.PRNGKey(0)
    k_param, k_ids = jax.random.split(key)

    params = init_params(k_param, CFG)

    B, S = 2, 8
    input_ids = jax.random.randint(k_ids, (B, S), 0, CFG["vocab"], dtype=jnp.int32)
    attention_mask = jnp.array(
        [[1, 1, 1, 1, 1, 1, 1, 1],
         [1, 1, 1, 1, 1, 0, 0, 0]], dtype=jnp.int32)

    pooled = forward(params, input_ids, attention_mask)
    pooled = jax.block_until_ready(pooled)

    assert pooled.shape == (B, CFG["hidden"])
    assert bool(jnp.all(jnp.isfinite(pooled)))
    print("KERNEL_OK")
</pallas_src>

<mosaic_0001>
module attributes {stable_mosaic.version = 11 : i64} {
  func.func @_encoder_kernel(%arg0: i32, %arg1: i32, %arg2: memref<16x128xf32, #tpu.memory_space<any>>, %arg3: memref<1x1x8xf32, #tpu.memory_space<vmem>>, %arg4: memref<1x128x384xbf16, #tpu.memory_space<vmem>>, %arg5: memref<1x1x384xf32, #tpu.memory_space<vmem>>, %arg6: memref<1x128x128xbf16, #tpu.memory_space<vmem>>, %arg7: memref<1x1x128xf32, #tpu.memory_space<vmem>>, %arg8: memref<1x1x128xf32, #tpu.memory_space<vmem>>, %arg9: memref<1x1x128xf32, #tpu.memory_space<vmem>>, %arg10: memref<1x128x512xbf16, #tpu.memory_space<vmem>>, %arg11: memref<1x1x512xf32, #tpu.memory_space<vmem>>, %arg12: memref<1x512x128xbf16, #tpu.memory_space<vmem>>, %arg13: memref<1x1x128xf32, #tpu.memory_space<vmem>>, %arg14: memref<1x1x128xf32, #tpu.memory_space<vmem>>, %arg15: memref<1x1x128xf32, #tpu.memory_space<vmem>>, %arg16: memref<128x128xbf16, #tpu.memory_space<vmem>>, %arg17: memref<1x128xf32, #tpu.memory_space<vmem>>, %arg18: memref<1x1x128xf32, #tpu.memory_space<vmem>>, %arg19: memref<8x128xf32, #tpu.memory_space<vmem>>, %arg20: memref<8x128xf32, #tpu.memory_space<vmem>>) attributes {dimension_semantics = [#tpu.dimension_semantics<parallel>, #tpu.dimension_semantics<arbitrary>], iteration_bounds = array<i64: 2, 2>, scalar_prefetch = 0 : i64, scratch_operands = 2 : i64, tpu.core_type = #tpu.core_type<tc>, window_params = [{}, {transform_indices = @transform_1, window_bounds = array<i64: 1, 1, 8>}, {transform_indices = @transform_2, window_bounds = array<i64: 1, 128, 384>}, {transform_indices = @transform_3, window_bounds = array<i64: 1, 1, 384>}, {transform_indices = @transform_4, window_bounds = array<i64: 1, 128, 128>}, {transform_indices = @transform_5, window_bounds = array<i64: 1, 1, 128>}, {transform_indices = @transform_6, window_bounds = array<i64: 1, 1, 128>}, {transform_indices = @transform_7, window_bounds = array<i64: 1, 1, 128>}, {transform_indices = @transform_8, window_bounds = array<i64: 1, 128, 512>}, {transform_indices = @transform_9, window_bounds = array<i64: 1, 1, 512>}, {transform_indices = @transform_10, window_bounds = array<i64: 1, 512, 128>}, {transform_indices = @transform_11, window_bounds = array<i64: 1, 1, 128>}, {transform_indices = @transform_12, window_bounds = array<i64: 1, 1, 128>}, {transform_indices = @transform_13, window_bounds = array<i64: 1, 1, 128>}, {pipeline_mode = #tpu.pipeline_mode<synchronous>, transform_indices = @transform_14, window_bounds = array<i64: 128, 128>}, {pipeline_mode = #tpu.pipeline_mode<synchronous>, transform_indices = @transform_15, window_bounds = array<i64: 1, 128>}, {transform_indices = @transform_16, window_bounds = array<i64: 1, 1, 128>}]} {
    %c0_i32 = arith.constant 0 : i32
    %0 = arith.cmpi eq, %arg1, %c0_i32 : i32
    %1 = arith.extui %0 : i1 to i32
    %c0_i32_0 = arith.constant 0 : i32
    %2 = arith.cmpi ne, %1, %c0_i32_0 : i32
    scf.if %2 {
      %c8_i32 = arith.constant 8 : i32
      %163 = arith.muli %arg0, %c8_i32 : i32
      %164 = tpu.assume_multiple %163, 8 : i32
      "tpu.region"() ({
        %165 = tpu.sem_alloc : memref<!tpu.dma_semaphore, #tpu.memory_space<semaphore_mem>>
        %c0_i32_75 = arith.constant 0 : i32
        %166 = tpu.memref_slice %arg2[%164, %c0_i32_75] : memref<16x128xf32, #tpu.memory_space<any>> -> memref<8x128xf32, #tpu.memory_space<any>>
        tpu.enqueue_dma source(%166 : memref<8x128xf32, #tpu.memory_space<any>>) target(%arg19 : memref<8x128xf32, #tpu.memory_space<vmem>>) target_semaphore(%165 : memref<!tpu.dma_semaphore, #tpu.memory_space<semaphore_mem>>)
        %c0_i32_76 = arith.constant 0 : i32
        %167 = tpu.memref_slice %arg2[%164, %c0_i32_76] : memref<16x128xf32, #tpu.memory_space<any>> -> memref<8x128xf32, #tpu.memory_space<any>>
        tpu.wait_dma2 semaphore(%165 : memref<!tpu.dma_semaphore, #tpu.memory_space<semaphore_mem>>) src(%167 : memref<8x128xf32, #tpu.memory_space<any>>) dst(%arg19 : memref<8x128xf32, #tpu.memory_space<vmem>>)
        tpu.yield
      }) : () -> ()
    } else {
    }
    %c0 = arith.constant 0 : index
    %c0_1 = arith.constant 0 : index
    %3 = vector.load %arg19[%c0, %c0_1] : memref<8x128xf32, #tpu.memory_space<vmem>>, vector<8x128xf32>
    %4 = arith.truncf %3 : vector<8x128xf32> to vector<8x128xbf16>
    %c0_2 = arith.constant 0 : index
    %c0_3 = arith.constant 0 : index
    %c0_4 = arith.constant 0 : index
    %5 = vector.load %arg4[%c0_2, %c0_3, %c0_4] : memref<1x128x384xbf16, #tpu.memory_space<vmem>>, vector<1x128x384xbf16>
    %6 = vector.shape_cast %5 : vector<1x128x384xbf16> to vector<128x384xbf16>
    %cst = arith.constant dense<0.000000e+00> : vector<8x384xf32>
    %7 = tpu.matmul %4, %6, %cst {dimension_numbers = #tpu.dot_dimension_numbers<[1], [0], [0], [1], [0, 0, 1, 1], [], []>} : vector<8x128xbf16>, vector<128x384xbf16>, vector<8x384xf32> -> vector<8x384xf32>
    %c0_5 = arith.constant 0 : index
    %c0_6 = arith.constant 0 : index
    %c0_7 = arith.constant 0 : index
    %8 = vector.load %arg5[%c0_5, %c0_6, %c0_7] : memref<1x1x384xf32, #tpu.memory_space<vmem>>, vector<1x1x384xf32>
    %9 = vector.shape_cast %8 : vector<1x1x384xf32> to vector<1x384xf32>
    %10 = vector.broadcast %9 : vector<1x384xf32> to vector<8x384xf32>
    %11 = arith.addf %7, %10 : vector<8x384xf32>
    %12 = vector.extract_strided_slice %11 {offsets = [0, 0], sizes = [8, 128], strides = [1, 1]} : vector<8x384xf32> to vector<8x128xf32>
    %cst_8 = arith.constant 1.250000e-01 : f32
    %13 = vector.broadcast %cst_8 : f32 to vector<8x128xf32>
    %14 = arith.mulf %12, %13 : vector<8x128xf32>
    %15 = arith.truncf %14 : vector<8x128xf32> to vector<8x128xbf16>
    %16 = vector.extract_strided_slice %11 {offsets = [0, 128], sizes = [8, 128], strides = [1, 1]} : vector<8x384xf32> to vector<8x128xf32>
    %17 = arith.truncf %16 : vector<8x128xf32> to vector<8x128xbf16>
    %18 = vector.extract_strided_slice %11 {offsets = [0, 256], sizes = [8, 128], strides = [1, 1]} : vector<8x384xf32> to vector<8x128xf32>
    %19 = arith.truncf %18 : vector<8x128xf32> to vector<8x128xbf16>
    %c0_9 = arith.constant 0 : index
    %c0_10 = arith.constant 0 : index
    %c0_11 = arith.constant 0 : index
    %20 = vector.load %arg3[%c0_9, %c0_10, %c0_11] : memref<1x1x8xf32, #tpu.memory_space<vmem>>, vector<1x1x8xf32>
    %21 = vector.extract_strided_slice %15 {offsets = [0, 0], sizes = [8, 64], strides = [1, 1]} : vector<8x128xbf16> to vector<8x64xbf16>
    %22 = vector.shape_cast %21 : vector<8x64xbf16> to vector<1x8x64xbf16>
    %23 = vector.extract_strided_slice %17 {offsets = [0, 0], sizes = [8, 64], strides = [1, 1]} : vector<8x128xbf16> to vector<8x64xbf16>
    %24 = vector.shape_cast %23 : vector<8x64xbf16> to vector<1x8x64xbf16>
    %25 = vector.extract_strided_slice %19 {offsets = [0, 0], sizes = [8, 64], strides = [1, 1]} : vector<8x128xbf16> to vector<8x64xbf16>
    %26 = vector.shape_cast %25 : vector<8x64xbf16> to vector<1x8x64xbf16>
    "tpu.trace_start"() <{level = 10 : i32, message = "bqd,bkd->bqk"}> : () -> ()
    %cst_12 = arith.constant dense<0.000000e+00> : vector<1x8x8xf32>
    %27 = tpu.matmul %22, %24, %cst_12 {dimension_numbers = #tpu.dot_dimension_numbers<[2], [2], [1], [1], [0, 0, 0, 1, 1, 1], [0], [0]>} : vector<1x8x64xbf16>, vector<1x8x64xbf16>, vector<1x8x8xf32> -> vector<1x8x8xf32>
    "tpu.trace_stop"() : () -> ()
    %28 = vector.broadcast %20 : vector<1x1x8xf32> to vector<1x8x8xf32>
    %29 = arith.addf %27, %28 : vector<1x8x8xf32>
    %cst_13 = arith.constant dense<0xFF800000> : vector<1x8xf32>
    %30 = vector.multi_reduction <maximumf>, %29, %cst_13 [2] : vector<1x8x8xf32> to vector<1x8xf32>
    %31 = vector.shape_cast %30 : vector<1x8xf32> to vector<1x8x1xf32>
    %32 = vector.broadcast %31 : vector<1x8x1xf32> to vector<1x8x8xf32>
    %33 = arith.subf %29, %32 : vector<1x8x8xf32>
    %34 = math.exp %33 : vector<1x8x8xf32>
    %cst_14 = arith.constant dense<0.000000e+00> : vector<1x8xf32>
    %35 = vector.multi_reduction <add>, %34, %cst_14 [2] : vector<1x8x8xf32> to vector<1x8xf32>
    %36 = vector.shape_cast %35 : vector<1x8xf32> to vector<1x8x1xf32>
    %37 = tpu.reciprocal %36 {approx = true} : vector<1x8x1xf32> -> vector<1x8x1xf32>
    %38 = vector.broadcast %37 : vector<1x8x1xf32> to vector<1x8x8xf32>
    %39 = arith.mulf %34, %38 : vector<1x8x8xf32>
    %40 = arith.truncf %39 : vector<1x8x8xf32> to vector<1x8x8xbf16>
    "tpu.trace_start"() <{level = 10 : i32, message = "bqk,bkd->bqd"}> : () -> ()
    %cst_15 = arith.constant dense<0.000000e+00> : vector<1x8x64xf32>
    %41 = tpu.matmul %40, %26, %cst_15 {dimension_numbers = #tpu.dot_dimension_numbers<[2], [1], [1], [2], [0, 0, 0, 1, 1, 2], [0], [0]>} : vector<1x8x8xbf16>, vector<1x8x64xbf16>, vector<1x8x64xf32> -> vector<1x8x64xf32>
    "tpu.trace_stop"() : () -> ()
    %42 = vector.shape_cast %41 : vector<1x8x64xf32> to vector<8x64xf32>
    %c0_16 = arith.constant 0 : index
    %c0_17 = arith.constant 0 : index
    %43 = vector.load %arg20[%c0_16, %c0_17] : memref<8x128xf32, #tpu.memory_space<vmem>>, vector<8x64xf32>
    tpu.vector_store %arg20[%c0_16, %c0_17], %42 {strides = array<i32>} : memref<8x128xf32, #tpu.memory_space<vmem>>, vector<8x64xf32>,
    %44 = vector.extract_strided_slice %15 {offsets = [0, 64], sizes = [8, 64], strides = [1, 1]} : vector<8x128xbf16> to vector<8x64xbf16>
    %45 = vector.shape_cast %44 : vector<8x64xbf16> to vector<1x8x64xbf16>
    %46 = vector.extract_strided_slice %17 {offsets = [0, 64], sizes = [8, 64], strides = [1, 1]} : vector<8x128xbf16> to vector<8x64xbf16>
    %47 = vector.shape_cast %46 : vector<8x64xbf16> to vector<1x8x64xbf16>
    %48 = vector.extract_strided_slice %19 {offsets = [0, 64], sizes = [8, 64], strides = [1, 1]} : vector<8x128xbf16> to vector<8x64xbf16>
    %49 = vector.shape_cast %48 : vector<8x64xbf16> to vector<1x8x64xbf16>
    "tpu.trace_start"() <{level = 10 : i32, message = "bqd,bkd->bqk"}> : () -> ()
    %cst_18 = arith.constant dense<0.000000e+00> : vector<1x8x8xf32>
    %50 = tpu.matmul %45, %47, %cst_18 {dimension_numbers = #tpu.dot_dimension_numbers<[2], [2], [1], [1], [0, 0, 0, 1, 1, 1], [0], [0]>} : vector<1x8x64xbf16>, vector<1x8x64xbf16>, vector<1x8x8xf32> -> vector<1x8x8xf32>
    "tpu.trace_stop"() : () -> ()
    %51 = vector.broadcast %20 : vector<1x1x8xf32> to vector<1x8x8xf32>
    %52 = arith.addf %50, %51 : vector<1x8x8xf32>
    %cst_19 = arith.constant dense<0xFF800000> : vector<1x8xf32>
    %53 = vector.multi_reduction <maximumf>, %52, %cst_19 [2] : vector<1x8x8xf32> to vector<1x8xf32>
    %54 = vector.shape_cast %53 : vector<1x8xf32> to vector<1x8x1xf32>
    %55 = vector.broadcast %54 : vector<1x8x1xf32> to vector<1x8x8xf32>
    %56 = arith.subf %52, %55 : vector<1x8x8xf32>
    %57 = math.exp %56 : vector<1x8x8xf32>
    %cst_20 = arith.constant dense<0.000000e+00> : vector<1x8xf32>
    %58 = vector.multi_reduction <add>, %57, %cst_20 [2] : vector<1x8x8xf32> to vector<1x8xf32>
    %59 = vector.shape_cast %58 : vector<1x8xf32> to vector<1x8x1xf32>
    %60 = tpu.reciprocal %59 {approx = true} : vector<1x8x1xf32> -> vector<1x8x1xf32>
    %61 = vector.broadcast %60 : vector<1x8x1xf32> to vector<1x8x8xf32>
    %62 = arith.mulf %57, %61 : vector<1x8x8xf32>
    %63 = arith.truncf %62 : vector<1x8x8xf32> to vector<1x8x8xbf16>
    "tpu.trace_start"() <{level = 10 : i32, message = "bqk,bkd->bqd"}> : () -> ()
    %cst_21 = arith.constant dense<0.000000e+00> : vector<1x8x64xf32>
    %64 = tpu.matmul %63, %49, %cst_21 {dimension_numbers = #tpu.dot_dimension_numbers<[2], [1], [1], [2], [0, 0, 0, 1, 1, 2], [0], [0]>} : vector<1x8x8xbf16>, vector<1x8x64xbf16>, vector<1x8x64xf32> -> vector<1x8x64xf32>
    "tpu.trace_stop"() : () -> ()
    %65 = vector.shape_cast %64 : vector<1x8x64xf32> to vector<8x64xf32>
    %c0_22 = arith.constant 0 : index
    %c64 = arith.constant 64 : index
    %66 = vector.load %arg20[%c0_22, %c64] : memref<8x128xf32, #tpu.memory_space<vmem>>, vector<8x64xf32>
    tpu.vector_store %arg20[%c0_22, %c64], %65 {strides = array<i32>} : memref<8x128xf32, #tpu.memory_space<vmem>>, vector<8x64xf32>,
    %c0_23 = arith.constant 0 : index
    %c0_24 = arith.constant 0 : index
    %67 = vector.load %arg20[%c0_23, %c0_24] : memref<8x128xf32, #tpu.memory_space<vmem>>, vector<8x128xf32>
    %68 = arith.truncf %67 : vector<8x128xf32> to vector<8x128xbf16>
    %c0_25 = arith.constant 0 : index
    %c0_26 = arith.constant 0 : index
    %c0_27 = arith.constant 0 : index
    %69 = vector.load %arg6[%c0_25, %c0_26, %c0_27] : memref<1x128x128xbf16, #tpu.memory_space<vmem>>, vector<1x128x128xbf16>
    %70 = vector.shape_cast %69 : vector<1x128x128xbf16> to vector<128x128xbf16>
    %cst_28 = arith.constant dense<0.000000e+00> : vector<8x128xf32>
    %71 = tpu.matmul %68, %70, %cst_28 {dimension_numbers = #tpu.dot_dimension_numbers<[1], [0], [0], [1], [0, 0, 1, 1], [], []>} : vector<8x128xbf16>, vector<128x128xbf16>, vector<8x128xf32> -> vector<8x128xf32>
    %c0_29 = arith.constant 0 : index
    %c0_30 = arith.constant 0 : index
    %c0_31 = arith.constant 0 : index
    %72 = vector.load %arg7[%c0_29, %c0_30, %c0_31] : memref<1x1x128xf32, #tpu.memory_space<vmem>>, vector<1x1x128xf32>
    %73 = vector.shape_cast %72 : vector<1x1x128xf32> to vector<1x128xf32>
    %74 = vector.broadcast %73 : vector<1x128xf32> to vector<8x128xf32>
    %75 = arith.addf %71, %74 : vector<8x128xf32>
    %76 = arith.addf %75, %3 : vector<8x128xf32>
    %c0_32 = arith.constant 0 : index
    %c0_33 = arith.constant 0 : index
    %c0_34 = arith.constant 0 : index
    %77 = vector.load %arg8[%c0_32, %c0_33, %c0_34] : memref<1x1x128xf32, #tpu.memory_space<vmem>>, vector<1x1x128xf32>
    %78 = vector.shape_cast %77 : vector<1x1x128xf32> to vector<1x128xf32>
    %c0_35 = arith.constant 0 : index
    %c0_36 = arith.constant 0 : index
    %c0_37 = arith.constant 0 : index
    %79 = vector.load %arg9[%c0_35, %c0_36, %c0_37] : memref<1x1x128xf32, #tpu.memory_space<vmem>>, vector<1x1x128xf32>
    %80 = vector.shape_cast %79 : vector<1x1x128xf32> to vector<1x128xf32>
    %cst_38 = arith.constant dense<0.000000e+00> : vector<8xf32>
    %81 = vector.multi_reduction <add>, %76, %cst_38 [1] : vector<8x128xf32> to vector<8xf32>
    %82 = vector.shape_cast %81 : vector<8xf32> to vector<8x1xf32>
    %cst_39 = arith.constant 1.280000e+02 : f32
    %83 = vector.broadcast %cst_39 : f32 to vector<8x1xf32>
    %84 = arith.divf %82, %83 : vector<8x1xf32>
    %85 = vector.broadcast %84 : vector<8x1xf32> to vector<8x128xf32>
    %86 = arith.subf %76, %85 : vector<8x128xf32>
    %87 = arith.mulf %86, %86 : vector<8x128xf32>
    %cst_40 = arith.constant dense<0.000000e+00> : vector<8xf32>
    %88 = vector.multi_reduction <add>, %87, %cst_40 [1] : vector<8x128xf32> to vector<8xf32>
    %89 = vector.shape_cast %88 : vector<8xf32> to vector<8x1xf32>
    %cst_41 = arith.constant 1.280000e+02 : f32
    %90 = vector.broadcast %cst_41 : f32 to vector<8x1xf32>
    %91 = arith.divf %89, %90 : vector<8x1xf32>
    %92 = vector.broadcast %84 : vector<8x1xf32> to vector<8x128xf32>
    %93 = arith.subf %76, %92 : vector<8x128xf32>
    %cst_42 = arith.constant 9.99999996E-13 : f32
    %94 = vector.broadcast %cst_42 : f32 to vector<8x1xf32>
    %95 = arith.addf %91, %94 : vector<8x1xf32>
    %96 = math.rsqrt %95 : vector<8x1xf32>
    %97 = vector.broadcast %96 : vector<8x1xf32> to vector<8x128xf32>
    %98 = arith.mulf %93, %97 : vector<8x128xf32>
    %99 = vector.broadcast %78 : vector<1x128xf32> to vector<8x128xf32>
    %100 = arith.mulf %98, %99 : vector<8x128xf32>
    %101 = vector.broadcast %80 : vector<1x128xf32> to vector<8x128xf32>
    %102 = arith.addf %100, %101 : vector<8x128xf32>
    %103 = arith.truncf %102 : vector<8x128xf32> to vector<8x128xbf16>
    %c0_43 = arith.constant 0 : index
    %c0_44 = arith.constant 0 : index
    %c0_45 = arith.constant 0 : index
    %104 = vector.load %arg10[%c0_43, %c0_44, %c0_45] : memref<1x128x512xbf16, #tpu.memory_space<vmem>>, vector<1x128x512xbf16>
    %105 = vector.shape_cast %104 : vector<1x128x512xbf16> to vector<128x512xbf16>
    %cst_46 = arith.constant dense<0.000000e+00> : vector<8x512xf32>
    %106 = tpu.matmul %103, %105, %cst_46 {dimension_numbers = #tpu.dot_dimension_numbers<[1], [0], [0], [1], [0, 0, 1, 1], [], []>} : vector<8x128xbf16>, vector<128x512xbf16>, vector<8x512xf32> -> vector<8x512xf32>
    %c0_47 = arith.constant 0 : index
    %c0_48 = arith.constant 0 : index
    %c0_49 = arith.constant 0 : index
    %107 = vector.load %arg11[%c0_47, %c0_48, %c0_49] : memref<1x1x512xf32, #tpu.memory_space<vmem>>, vector<1x1x512xf32>
    %108 = vector.shape_cast %107 : vector<1x1x512xf32> to vector<1x512xf32>
    %109 = vector.broadcast %108 : vector<1x512xf32> to vector<8x512xf32>
    %110 = arith.addf %106, %109 : vector<8x512xf32>
    %cst_50 = arith.constant 5.000000e-01 : f32
    %111 = vector.broadcast %cst_50 : f32 to vector<8x512xf32>
    %112 = arith.mulf %111, %110 : vector<8x512xf32>
    %cst_51 = arith.constant 4.471500e-02 : f32
    %113 = vector.broadcast %cst_51 : f32 to vector<8x512xf32>
    %114 = arith.mulf %113, %110 : vector<8x512xf32>
    %115 = arith.mulf %114, %110 : vector<8x512xf32>
    %116 = arith.mulf %115, %110 : vector<8x512xf32>
    %117 = arith.addf %110, %116 : vector<8x512xf32>
    %cst_52 = arith.constant 0.797884583 : f32
    %118 = vector.broadcast %cst_52 : f32 to vector<8x512xf32>
    %119 = arith.mulf %118, %117 : vector<8x512xf32>
    %120 = math.tanh %119 : vector<8x512xf32>
    %cst_53 = arith.constant 1.000000e+00 : f32
    %121 = vector.broadcast %cst_53 : f32 to vector<8x512xf32>
    %122 = arith.addf %121, %120 : vector<8x512xf32>
    %123 = arith.mulf %112, %122 : vector<8x512xf32>
    %124 = arith.truncf %123 : vector<8x512xf32> to vector<8x512xbf16>
    %c0_54 = arith.constant 0 : index
    %c0_55 = arith.constant 0 : index
    %c0_56 = arith.constant 0 : index
    %125 = vector.load %arg12[%c0_54, %c0_55, %c0_56] : memref<1x512x128xbf16, #tpu.memory_space<vmem>>, vector<1x512x128xbf16>
    %126 = vector.shape_cast %125 : vector<1x512x128xbf16> to vector<512x128xbf16>
    %cst_57 = arith.constant dense<0.000000e+00> : vector<8x128xf32>
    %127 = tpu.matmul %124, %126, %cst_57 {dimension_numbers = #tpu.dot_dimension_numbers<[1], [0], [0], [1], [0, 0, 1, 1], [], []>} : vector<8x512xbf16>, vector<512x128xbf16>, vector<8x128xf32> -> vector<8x128xf32>
    %c0_58 = arith.constant 0 : index
    %c0_59 = arith.constant 0 : index
    %c0_60 = arith.constant 0 : index
    %128 = vector.load %arg13[%c0_58, %c0_59, %c0_60] : memref<1x1x128xf32, #tpu.memory_space<vmem>>, vector<1x1x128xf32>
    %129 = vector.shape_cast %128 : vector<1x1x128xf32> to vector<1x128xf32>
    %130 = vector.broadcast %129 : vector<1x128xf32> to vector<8x128xf32>
    %131 = arith.addf %127, %130 : vector<8x128xf32>
    %132 = arith.addf %131, %102 : vector<8x128xf32>
    %c0_61 = arith.constant 0 : index
    %c0_62 = arith.constant 0 : index
    %c0_63 = arith.constant 0 : index
    %133 = vector.load %arg14[%c0_61, %c0_62, %c0_63] : memref<1x1x128xf32, #tpu.memory_space<vmem>>, vector<1x1x128xf32>
    %134 = vector.shape_cast %133 : vector<1x1x128xf32> to vector<1x128xf32>
    %c0_64 = arith.constant 0 : index
    %c0_65 = arith.constant 0 : index
    %c0_66 = arith.constant 0 : index
    %135 = vector.load %arg15[%c0_64, %c0_65, %c0_66] : memref<1x1x128xf32, #tpu.memory_space<vmem>>, vector<1x1x128xf32>
    %136 = vector.shape_cast %135 : vector<1x1x128xf32> to vector<1x128xf32>
    %cst_67 = arith.constant dense<0.000000e+00> : vector<8xf32>
    %137 = vector.multi_reduction <add>, %132, %cst_67 [1] : vector<8x128xf32> to vector<8xf32>
    %138 = vector.shape_cast %137 : vector<8xf32> to vector<8x1xf32>
    %cst_68 = arith.constant 1.280000e+02 : f32
    %139 = vector.broadcast %cst_68 : f32 to vector<8x1xf32>
    %140 = arith.divf %138, %139 : vector<8x1xf32>
    %141 = vector.broadcast %140 : vector<8x1xf32> to vector<8x128xf32>
    %142 = arith.subf %132, %141 : vector<8x128xf32>
    %143 = arith.mulf %142, %142 : vector<8x128xf32>
    %cst_69 = arith.constant dense<0.000000e+00> : vector<8xf32>
    %144 = vector.multi_reduction <add>, %143, %cst_69 [1] : vector<8x128xf32> to vector<8xf32>
    %145 = vector.shape_cast %144 : vector<8xf32> to vector<8x1xf32>
    %cst_70 = arith.constant 1.280000e+02 : f32
    %146 = vector.broadcast %cst_70 : f32 to vector<8x1xf32>
    %147 = arith.divf %145, %146 : vector<8x1xf32>
    %148 = vector.broadcast %140 : vector<8x1xf32> to vector<8x128xf32>
    %149 = arith.subf %132, %148 : vector<8x128xf32>
    %cst_71 = arith.constant 9.99999996E-13 : f32
    %150 = vector.broadcast %cst_71 : f32 to vector<8x1xf32>
    %151 = arith.addf %147, %150 : vector<8x1xf32>
    %152 = math.rsqrt %151 : vector<8x1xf32>
    %153 = vector.broadcast %152 : vector<8x1xf32> to vector<8x128xf32>
    %154 = arith.mulf %149, %153 : vector<8x128xf32>
    %155 = vector.broadcast %134 : vector<1x128xf32> to vector<8x128xf32>
    %156 = arith.mulf %154, %155 : vector<8x128xf32>
    %157 = vector.broadcast %136 : vector<1x128xf32> to vector<8x128xf32>
    %158 = arith.addf %156, %157 : vector<8x128xf32>
    %c0_72 = arith.constant 0 : index
    %c0_73 = arith.constant 0 : index
    %159 = vector.load %arg19[%c0_72, %c0_73] : memref<8x128xf32, #tpu.memory_space<vmem>>, vector<8x128xf32>
    tpu.vector_store %arg19[%c0_72, %c0_73], %158 {strides = array<i32>} : memref<8x128xf32, #tpu.memory_space<vmem>>, vector<8x128xf32>,
    %c1_i32 = arith.constant 1 : i32
    %160 = arith.cmpi eq, %arg1, %c1_i32 : i32
    %161 = arith.extui %160 : i1 to i32
    %c0_i32_74 = arith.constant 0 : i32
    %162 = arith.cmpi ne, %161, %c0_i32_74 : i32
    scf.if %162 {
      %163 = vector.shape_cast %158 : vector<8x128xf32> to vector<1x8x128xf32>
      %164 = vector.extract_strided_slice %163 {offsets = [0, 0, 0], sizes = [1, 1, 128], strides = [1, 1, 1]} : vector<1x8x128xf32> to vector<1x1x128xf32>
      %165 = vector.shape_cast %164 : vector<1x1x128xf32> to vector<1x128xf32>
      %166 = arith.truncf %165 : vector<1x128xf32> to vector<1x128xbf16>
      %c0_75 = arith.constant 0 : index
      %c0_76 = arith.constant 0 : index
      %167 = vector.load %arg16[%c0_75, %c0_76] : memref<128x128xbf16, #tpu.memory_space<vmem>>, vector<128x128xbf16>
      %cst_77 = arith.constant dense<0.000000e+00> : vector<1x128xf32>
      %168 = tpu.matmul %166, %167, %cst_77 {dimension_numbers = #tpu.dot_dimension_numbers<[1], [0], [0], [1], [0, 0, 1, 1], [], []>} : vector<1x128xbf16>, vector<128x128xbf16>, vector<1x128xf32> -> vector<1x128xf32>
      %c0_78 = arith.constant 0 : index
      %c0_79 = arith.constant 0 : index
      %169 = vector.load %arg17[%c0_78, %c0_79] : memref<1x128xf32, #tpu.memory_space<vmem>>, vector<1x128xf32>
      %170 = arith.addf %168, %169 : vector<1x128xf32>
      %171 = math.tanh %170 : vector<1x128xf32>
      %c0_80 = arith.constant 0 : index
      %c0_81 = arith.constant 0 : index
      %c0_82 = arith.constant 0 : index
      %172 = vector.load %arg18[%c0_80, %c0_81, %c0_82] : memref<1x1x128xf32, #tpu.memory_space<vmem>>, vector<1x1x128xf32>
      %173 = vector.shape_cast %172 : vector<1x1x128xf32> to vector<1x128xf32>
      %174 = vector.shape_cast %171 : vector<1x128xf32> to vector<1x1x128xf32>
      tpu.vector_store %arg18[%c0_80, %c0_81, %c0_82], %174 {strides = array<i32>} : memref<1x1x128xf32, #tpu.memory_space<vmem>>, vector<1x1x128xf32>,
    } else {
    }
    return
  }
  func.func @transform_1(%arg0: i32, %arg1: i32) -> (i32, i32, i32) {
    %c0_i32 = arith.constant 0 : i32
    %c0_i32_0 = arith.constant 0 : i32
    %c0_i32_1 = arith.constant 0 : i32
    return %arg0, %c0_i32, %c0_i32_0 : i32, i32, i32
  }
  func.func @transform_2(%arg0: i32, %arg1: i32) -> (i32, i32, i32) {
    %c0_i32 = arith.constant 0 : i32
    %c0_i32_0 = arith.constant 0 : i32
    %c0_i32_1 = arith.constant 0 : i32
    return %arg1, %c0_i32, %c0_i32_0 : i32, i32, i32
  }
  func.func @transform_3(%arg0: i32, %arg1: i32) -> (i32, i32, i32) {
    %c0_i32 = arith.constant 0 : i32
    %c0_i32_0 = arith.constant 0 : i32
    %c0_i32_1 = arith.constant 0 : i32
    return %arg1, %c0_i32, %c0_i32_0 : i32, i32, i32
  }
  func.func @transform_4(%arg0: i32, %arg1: i32) -> (i32, i32, i32) {
    %c0_i32 = arith.constant 0 : i32
    %c0_i32_0 = arith.constant 0 : i32
    %c0_i32_1 = arith.constant 0 : i32
    return %arg1, %c0_i32, %c0_i32_0 : i32, i32, i32
  }
  func.func @transform_5(%arg0: i32, %arg1: i32) -> (i32, i32, i32) {
    %c0_i32 = arith.constant 0 : i32
    %c0_i32_0 = arith.constant 0 : i32
    %c0_i32_1 = arith.constant 0 : i32
    return %arg1, %c0_i32, %c0_i32_0 : i32, i32, i32
  }
  func.func @transform_6(%arg0: i32, %arg1: i32) -> (i32, i32, i32) {
    %c0_i32 = arith.constant 0 : i32
    %c0_i32_0 = arith.constant 0 : i32
    %c0_i32_1 = arith.constant 0 : i32
    return %arg1, %c0_i32, %c0_i32_0 : i32, i32, i32
  }
  func.func @transform_7(%arg0: i32, %arg1: i32) -> (i32, i32, i32) {
    %c0_i32 = arith.constant 0 : i32
    %c0_i32_0 = arith.constant 0 : i32
    %c0_i32_1 = arith.constant 0 : i32
    return %arg1, %c0_i32, %c0_i32_0 : i32, i32, i32
  }
  func.func @transform_8(%arg0: i32, %arg1: i32) -> (i32, i32, i32) {
    %c0_i32 = arith.constant 0 : i32
    %c0_i32_0 = arith.constant 0 : i32
    %c0_i32_1 = arith.constant 0 : i32
    return %arg1, %c0_i32, %c0_i32_0 : i32, i32, i32
  }
  func.func @transform_9(%arg0: i32, %arg1: i32) -> (i32, i32, i32) {
    %c0_i32 = arith.constant 0 : i32
    %c0_i32_0 = arith.constant 0 : i32
    %c0_i32_1 = arith.constant 0 : i32
    return %arg1, %c0_i32, %c0_i32_0 : i32, i32, i32
  }
  func.func @transform_10(%arg0: i32, %arg1: i32) -> (i32, i32, i32) {
    %c0_i32 = arith.constant 0 : i32
    %c0_i32_0 = arith.constant 0 : i32
    %c0_i32_1 = arith.constant 0 : i32
    return %arg1, %c0_i32, %c0_i32_0 : i32, i32, i32
  }
  func.func @transform_11(%arg0: i32, %arg1: i32) -> (i32, i32, i32) {
    %c0_i32 = arith.constant 0 : i32
    %c0_i32_0 = arith.constant 0 : i32
    %c0_i32_1 = arith.constant 0 : i32
    return %arg1, %c0_i32, %c0_i32_0 : i32, i32, i32
  }
  func.func @transform_12(%arg0: i32, %arg1: i32) -> (i32, i32, i32) {
    %c0_i32 = arith.constant 0 : i32
    %c0_i32_0 = arith.constant 0 : i32
    %c0_i32_1 = arith.constant 0 : i32
    return %arg1, %c0_i32, %c0_i32_0 : i32, i32, i32
  }
  func.func @transform_13(%arg0: i32, %arg1: i32) -> (i32, i32, i32) {
    %c0_i32 = arith.constant 0 : i32
    %c0_i32_0 = arith.constant 0 : i32
    %c0_i32_1 = arith.constant 0 : i32
    return %arg1, %c0_i32, %c0_i32_0 : i32, i32, i32
  }
  func.func @transform_14(%arg0: i32, %arg1: i32) -> (i32, i32) {
    %c0_i32 = arith.constant 0 : i32
    %c0_i32_0 = arith.constant 0 : i32
    %c0_i32_1 = arith.constant 0 : i32
    return %c0_i32, %c0_i32_0 : i32, i32
  }
  func.func @transform_15(%arg0: i32, %arg1: i32) -> (i32, i32) {
    %c0_i32 = arith.constant 0 : i32
    %c0_i32_0 = arith.constant 0 : i32
    %c0_i32_1 = arith.constant 0 : i32
    return %c0_i32, %c0_i32_0 : i32, i32
  }
  func.func @transform_16(%arg0: i32, %arg1: i32) -> (i32, i32, i32) {
    %c0_i32 = arith.constant 0 : i32
    %c0_i32_0 = arith.constant 0 : i32
    %c0_i32_1 = arith.constant 0 : i32
    return %arg0, %c0_i32, %c0_i32_0 : i32, i32, i32
  }
}

</mosaic_0001>

<bundles_post_ra>
// kernel: forward.1
= control target key start
LH: loop header
LB: loop body
LE: loop exit
PB: predicated region body
PF: predicated region fallthrough
CT: control target
= control target key end

     0   :  { %s4032_s0 = inlined_call_operand.vmem [shape: f32[16,128], index: 0, kind: input, shape index: {}]   ;;  %s4033_s1 = inlined_call_operand.vmem [shape: f32[2,1,8], index: 1, kind: input, shape index: {}]   ;;  %s4034_s2 = inlined_call_operand.hbm [shape: bf16[2,128,384], index: 2, kind: input, shape index: {}]   ;;  %s4035_s3 = inlined_call_operand.vmem [shape: f32[2,1,384], index: 3, kind: input, shape index: {}]   ;;  %s4036_s4 = inlined_call_operand.vmem [shape: bf16[2,128,128], index: 4, kind: input, shape index: {}]   ;;  %s4037_s5 = inlined_call_operand.vmem [shape: f32[2,1,128], index: 5, kind: input, shape index: {}]   ;;  %s4038_s6 = inlined_call_operand.vmem [shape: f32[2,1,128], index: 6, kind: input, shape index: {}]   ;;  %s4039_s7 = inlined_call_operand.vmem [shape: f32[2,1,128], index: 7, kind: input, shape index: {}]   ;;  %s4040_s8 = inlined_call_operand.hbm [shape: bf16[2,128,512], index: 8, kind: input, shape index: {}]   ;;  %s4041_s9 = inlined_call_operand.vmem [shape: f32[2,1,512], index: 9, kind: input, shape index: {}]   ;;  %s4042_s10 = inlined_call_operand.hbm [shape: bf16[2,512,128], index: 10, kind: input, shape index: {}]   ;;  %s4043_s11 = inlined_call_operand.vmem [shape: f32[2,1,128], index: 11, kind: input, shape index: {}]   ;;  %s4044_s12 = inlined_call_operand.vmem [shape: f32[2,1,128], index: 12, kind: input, shape index: {}]   ;;  %s4045_s13 = inlined_call_operand.vmem [shape: f32[2,1,128], index: 13, kind: input, shape index: {}]   ;;  %s4046_s14 = inlined_call_operand.vmem [shape: bf16[128,128], index: 14, kind: input, shape index: {}]   ;;  %s4047_s15 = inlined_call_operand.vmem [shape: f32[1,128], index: 15, kind: input, shape index: {}]   ;;  %s4048_s16 = inlined_call_operand.hbm [shape: f32[2,1,128], index: 16, kind: output, shape index: {}]  }
   0x1   :  { %4069 = sst [smem:[#allocation31_spill]] %s4032_s0 }
   0x2   :  { %4070 = sst [smem:[#allocation32_spill]] %s4034_s2 }
   0x3   :  { %4071 = sst [smem:[#allocation33_spill]] %s4035_s3 }
   0x4   :  { %4072 = sst [smem:[#allocation34_spill]] %s4036_s4 }
   0x5   :  { %4073 = sst [smem:[#allocation35_spill]] %s4037_s5 }
   0x6   :  { %4074 = sst [smem:[#allocation36_spill]] %s4038_s6 }
   0x7   :  { %4075 = sst [smem:[#allocation37_spill]] %s4039_s7 }
   0x8   :  { %4076 = sst [smem:[#allocation38_spill]] %s4040_s8 }
   0x9   :  { %4077 = sst [smem:[#allocation39_spill]] %s4041_s9 }
   0xa   :  { %4078 = sst [smem:[#allocation40_spill]] %s4042_s10 }
   0xb   :  { %4079 = sst [smem:[#allocation41_spill]] %s4043_s11 }
   0xc   :  { %4080 = sst [smem:[#allocation42_spill]] %s4044_s12 }
   0xd   :  { %4081 = sst [smem:[#allocation43_spill]] %s4045_s13 }
   0xe   :  { %4082 = sst [smem:[#allocation44_spill]] %s4046_s14 }
   0xf   :  { %4083 = sst [smem:[#allocation45_spill]] %s4047_s15 }
  0x10   :  { %4084 = sst [smem:[#allocation46_spill]] %s4048_s16 }
  0x11   :  { %21 = vsyncpa [#allocation5], 0 }
  0x12   :  { %23 = vsyncpa [#allocation5 + $0x1], 0 }
  0x13   :  { %24 = vsyncpa [#allocation8], 0 }
  0x14   :  { %26 = vsyncpa [#allocation8 + $0x1], 0 }
  0x15   :  { %27 = vsyncpa [#allocation6], 0 }
  0x16   :  { %29 = vsyncpa [#allocation6 + $0x1], 0  ;;  %s3412_s21 = smov 0   ;;  %s3414_s22 = smov 0  }
  0x17   :  { %s3416_s23 = smov 0   ;;  %s3418_s24 = smov 0  }
  0x18   :  { %s3420_s25 = smov 0   ;;  %s3422_s26 = smov 0  }
  0x19   :  { %s3424_s27 = smov 0   ;;  %s3426_s28 = smov 0  }
  0x1a   :  { %s3428_s29 = smov 0   ;;  %s3430_s30 = smov 0  }
  0x1b   :  { %s3432_s0 = smov 0  }
  0x1c LB: > { %4085 = sst [smem:[#allocation17_spill]] %s3269_s21  ;;  %s3466_s17 = sadd.s32 4294967295, %s3309_s0   ;;  %s3309_s0 = sphi %s3432_s0, %s35_s0   ;;  %s3305_s30 = sphi %s3430_s30, %s4153_s30   ;;  %s3301_s29 = sphi %s3428_s29, %s4152_s29   ;;  %s3297_s28 = sphi %s3426_s28, %s4151_s28   ;;  %s3293_s27 = sphi %s3424_s27, %s4150_s27   ;;  %s3289_s26 = sphi %s3422_s26, %s4149_s26   ;;  %s3285_s25 = sphi %s3420_s25, %s4148_s25   ;;  %s3281_s24 = sphi %s3418_s24, %s4147_s24   ;;  %s3277_s23 = sphi %s3416_s23, %s4156_s23   ;;  %s3273_s22 = sphi %s3414_s22, %s4155_s22   ;;  %s3269_s21 = sphi %s3412_s21, %s4154_s21  }
  0x1d   : > { %4086 = sst [smem:[#allocation18_spill]] %s3277_s23  ;;  %s2510_s18 = sadd.s32 4294967294, %s3309_s0  }
  0x1e   : > { %4087 = sst [smem:[#allocation19_spill]] %s3285_s25  ;;  %s44_s19 = sadd.s32 1, %s3301_s29 }
  0x1f   : > { %4088 = sst [smem:[#allocation20_spill]] %s3289_s26  ;;  %s47_s20 = sadd.s32 1, %s3305_s30 }
  0x20   : > { %4089 = sst [smem:[#allocation21_spill]] %s3301_s29  ;;  %p45_p0 = scmp.ge.s32.totalorder %s44_s19, 2 }
  0x21   : > { %4090 = sst [smem:[#allocation22_spill]] %s3305_s30  ;;  %s80_s16 = sadd.s32 1, %s3289_s26 }
  0x22   : > { %4091 = sst [smem:[#allocation23_spill]] %s3309_s0  ;;  %p87_p1 = scmp.ne.s32.totalorder %s3289_s26, %s3285_s25 }
  0x23   : > { %p88_p2 = scmp.eq.s32.totalorder %s3309_s0, 0  ;;  %s4158_s19 = smov (%p45_p0, %s44_s19), 0 }
  0x24   : > { %4092 = sst [smem:[#allocation24_spill]] %s4158_s19  ;;  %s4160_s20 = smov (!%p45_p0, %s47_s20), %s3305_s30 }
  0x25   : > { %s77_s15 = ssub.s32 %s3301_s29, %s4158_s19  ;;  %p3480_p3 = por %p88_p2, %p87_p1 }
  0x26   : > { %p49_p4 = scmp.ge.s32.totalorder %s4160_s20, 2  ;;  %p78_p5 = scmp.eq.s32.totalorder %s77_s15, 0 }
  0x27   : > { %p93_p6 = scmp.ne.s32.totalorder %s3285_s25, %s3281_s24  ;;  %p94_p7 = scmp.eq.s32.totalorder %s3466_s17, 0 }
  0x28   : > { %s4162_s20 = smov (%p49_p4, %s4160_s20), 0  ;;  %s434_s11 = sadd.s32 1, %s3277_s23 }
  0x29   : > { %4094 = sst [smem:[#allocation25_spill]] %s4162_s20  ;;  %p3491_p8 = por %p94_p7, %p93_p6 }
  0x2a   : > { %s3489_s13 = scalar_select %p78_p5, %s3289_s26, %s80_s16  }
  0x2b   : > { %s4096_s19 = scalar_select %p3491_p8, 1, 0 }
  0x2c   : > { %4095 = sst [smem:[#allocation26_spill]] %s3489_s13  ;;  %s431_s12 = ssub.s32 %s3305_s30, %s4162_s20 }
  0x2d   : > { %p432_p9 = scmp.eq.s32.totalorder %s431_s12, 0  ;;  %p444_p10 = scmp.ne.s32.totalorder %s3277_s23, %s3273_s22 }
  0x2e   : > { %p445_p11 = scmp.eq.s32.totalorder %s3466_s17, 3  ;;  %p450_p13 = scmp.ne.s32.totalorder %s3273_s22, %s3269_s21 }
  0x2f   : > { %s3502_s15 = scalar_select %p432_p9, %s3277_s23, %s434_s11  }
  0x30   : > { %p3504_p12 = por %p445_p11, %p444_p10  ;;  %p451_p0 = scmp.eq.s32.totalorder %s2510_s18, 3 }
  0x31   : > { %4097 = sst [smem:[#allocation27_spill]] %s3502_s15  ;;  %p2839_p1 = scmp.lt.s32.totalorder %s3309_s0, 4 }
  0x32   : > { %s4098_s24 = scalar_select %p3504_p12, 1, 0 }
  0x33   : > { %s3512_s16 = sand.u32 1, %s3289_s26   ;;  %p3514_p2 = por %p451_p0, %p450_p13 }
  0x34   : > { %4099 = sst [smem:[#allocation28_spill]] %s4098_s24  ;;  %s537_s12 = sand.u32 1, %s3309_s0  }
  0x35   : > { %s4100_s20 = scalar_select %p3514_p2, 1, 0 }
  0x36   : > { %p3521_p4 = pnand %p2839_p1, %p3480_p3  ;;  %s4060_s30 = sshll.u32 %s3512_s16, 8 }
  0x37   : > { %4101 = sst [smem:[#allocation29_spill]] %s4100_s20  ;;  %s4061_s13 = sshll.u32 %s3301_s29, 12 }
  0x38   : > { %s4103_s8 = sld [smem:[#allocation38_spill]]  ;;  %s541_s23 = scalar_lea.vmem [#allocation7], %s4060_s30 }
  0x39   : > { %s548_s14 = sshll.u32 %s541_s23, 4  ;;  %s3538_s20 = scalar_lea.sflag [#allocation8], %s537_s12  ;;  %s3536_s14 = int_to_ptr.vmem [resolvable:$true] %s548_s14 }
  0x3a   : > { %p3544_p5 = pneg %p3521_p4 }
  0x3e   : > { %s3532_s26 = scalar_lea.hbm %s4103_s8, %s4061_s13  ;;  %s3096_s30 = scalar_lea.hbm %s4103_s8, 8192 }
  0x3f   : > { %s3091_s21 = scalar_lea.hbm %s3532_s26, 4096  ;;  %p3097_p9 = scmp.lt.u32.totalorder %s3532_s26, %s4103_s8 }
  0x40   : > { %p3092_p3 = scmp.ne.s32.totalorder %s3532_s26, %s3091_s21  ;;  %p3098_p10 = scmp.lt.u32.totalorder %s3096_s30, %s3091_s21 }
  0x41   : > { %p3100_p13 = scmp.lt.u32.totalorder %s3091_s21, %s3532_s26 }
  0x42   : > { %p3094_p6 = pnand %p3544_p5, %p3092_p3  ;;  %p3099_p11 = por %p3098_p10, %p3097_p9 }
  0x44   : > { %p3095_p7 = pneg %p3094_p6  ;;  %p3101_p0 = por %p3100_p13, %p3099_p11 }
  0x46   : > { %p3102_p1 = pnand %p3101_p0, %p3095_p7 }
  0x48   : > { %3105 = shalt.err (!%p3102_p1)
}
  0x49   : > { %s3106_s12 = scalar_lea.vmem %s3536_s14, 4096  ;;  %s3311_s15 = smov [#allocation7]  }
  0x4a   : > { %p3107_p3 = scmp.ne.s32.totalorder %s3536_s14, %s3106_s12  ;;  %s3111_s18 = sshll.u32 %s3311_s15, 4  ;;  %s3112_s18 = int_to_ptr.vmem [resolvable:$false] %s3111_s18 }
  0x4b   : > { %s3113_s13 = scalar_lea.vmem %s3112_s18, 8192  ;;  %p3114_p12 = scmp.lt.s32.totalorder %s3536_s14, %s3112_s18 }
  0x4c   : > { %p3109_p6 = pnand %p3107_p3, %p3544_p5  ;;  %p3115_p8 = scmp.lt.s32.totalorder %s3113_s13, %s3106_s12 }
  0x4e   : > { %p3110_p2 = pneg %p3109_p6  ;;  %p3116_p9 = por %p3115_p8, %p3114_p12 }
  0x50   : > { %p3117_p10 = pnand %p3116_p9, %p3110_p2 }
  0x52   : > { %3120 = shalt.err (!%p3117_p10)
}
  0x53   : > { %s3312_s21 = smov 256   ;;  %s3313_s30 = smov 16  }
  0x54   : > { %2831 = dma.hbm_to_vmem [thread:$0]  (!%p3521_p4), %s3532_s26, 4096, %s3536_s14, %s3538_s20, %s3312_s21, %s3312_s21, %s3313_s30  }
  0x55   : > { %s4105_s23 = sshll.u32 %s3301_s29, 12  ;;  %s4106_s10 = sld [smem:[#allocation40_spill]] }
  0x56   : > { %s4107_s13 = sshll.u32 %s3512_s16, 8  ;;  %p2520_p8 = scmp.ge.s32.totalorder %s3309_s0, 1 }
  0x57   : > { %s569_s8 = scalar_lea.vmem [#allocation9], %s4107_s13  ;;  %p602_p12 = scmp.lt.s32.totalorder %s3309_s0, 5 }
  0x58   : > { %s576_s9 = sshll.u32 %s569_s8, 4  ;;  %s2813_s6 = smul.u32 192, %s3512_s16  ;;  %s3577_s9 = int_to_ptr.vmem [resolvable:$true] %s576_s9 }
  0x59   : > { %p3581_p2 = pnand %p2520_p8, %p602_p12  ;;  %s2814_s26 = smul.u32 3072, %s3301_s29 }
  0x5a   : > { %s4109_s2 = sld [smem:[#allocation32_spill]]  ;;  %s487_s8 = scalar_lea.vmem [#allocation4], %s2813_s6 }
  0x5b   : > { %s3573_s18 = scalar_lea.hbm %s4106_s10, %s4105_s23  ;;  %s494_s23 = sshll.u32 %s487_s8, 4  ;;  %s3592_s23 = int_to_ptr.vmem [resolvable:$true] %s494_s23 }
  0x5c   : > { %s4108_s7 = scalar_select %p3581_p2, 1, 0 }
  0x5d   : > { %s484_s12 = scalar_lea.sflag [#allocation5], %s3512_s16 }
  0x60   : > { %s3590_s30 = scalar_lea.hbm %s4109_s2, %s2814_s26  ;;  %s3126_s14 = scalar_lea.hbm %s4109_s2, 6144 }
  0x61   : > { %s3121_s15 = scalar_lea.hbm %s3590_s30, 3072  ;;  %p3127_p0 = scmp.lt.u32.totalorder %s3590_s30, %s4109_s2 }
  0x62   : > { %p3122_p7 = scmp.ne.s32.totalorder %s3590_s30, %s3121_s15  ;;  %p3128_p1 = scmp.lt.u32.totalorder %s3126_s14, %s3121_s15 }
  0x63   : > { %p3130_p6 = scmp.lt.u32.totalorder %s3121_s15, %s3590_s30 }
  0x64   : > { %p3124_p11 = pnand %p3122_p7, %p3544_p5  ;;  %p3129_p3 = por %p3128_p1, %p3127_p0 }
  0x66   : > { %p3125_p13 = pneg %p3124_p11  ;;  %p3131_p9 = por %p3130_p6, %p3129_p3 }
  0x68   : > { %p3132_p10 = pnand %p3131_p9, %p3125_p13 }
  0x6a   : > { %3135 = shalt.err (!%p3132_p10)
}
  0x6b   : > { %s3136_s6 = scalar_lea.vmem %s3592_s23, 3072  ;;  %s3314_s29 = smov [#allocation4]  }
  0x6c   : > { %p3137_p8 = scmp.ne.s32.totalorder %s3592_s23, %s3136_s6  ;;  %s3141_s8 = sshll.u32 %s3314_s29, 4  ;;  %s3142_s8 = int_to_ptr.vmem [resolvable:$false] %s3141_s8 }
  0x6d   : > { %s3143_s13 = scalar_lea.vmem %s3142_s8, 6144  ;;  %p3144_p11 = scmp.lt.s32.totalorder %s3592_s23, %s3142_s8 }
  0x6e   : > { %p3139_p12 = pnand %p3137_p8, %p3544_p5  ;;  %p3145_p2 = scmp.lt.s32.totalorder %s3143_s13, %s3136_s6 }
  0x70   : > { %p3140_p7 = pneg %p3139_p12  ;;  %p3146_p0 = por %p3145_p2, %p3144_p11 }
  0x72   : > { %p3147_p1 = pnand %p3146_p0, %p3140_p7 }
  0x74   : > { %3150 = shalt.err (!%p3147_p1)
}
  0x75   : > { %s3315_s15 = smov 192   ;;  %s3316_s14 = smov 12  }
  0x76   : > { %2828 = dma.hbm_to_vmem [thread:$0]  (!%p3521_p4), %s3590_s30, 3072, %s3592_s23, %s484_s12, %s3315_s15, %s3315_s15, %s3316_s14  }
  0x77   : > { %s3151_s26 = scalar_lea.hbm %s3573_s18, 4096  ;;  %s3156_s29 = scalar_lea.hbm %s4106_s10, 8192 }
  0x78   : > { %p3152_p13 = scmp.ne.s32.totalorder %s3573_s18, %s3151_s26  ;;  %p3157_p6 = scmp.lt.u32.totalorder %s3573_s18, %s4106_s10 }
  0x79   : > { %p3158_p9 = scmp.lt.u32.totalorder %s3156_s29, %s3151_s26  ;;  %p3160_p8 = scmp.lt.u32.totalorder %s3151_s26, %s3573_s18 }
  0x7a   : > { %p3154_p2 = pnand %p3152_p13, %p3544_p5 }
  0x7b   : > { %p3159_p10 = por %p3158_p9, %p3157_p6 }
  0x7c   : > { %p3155_p3 = pneg %p3154_p2 }
  0x7d   : > { %p3161_p12 = por %p3160_p8, %p3159_p10 }
  0x7f   : > { %p3162_p7 = pnand %p3161_p12, %p3155_p3 }
  0x81   : > { %3165 = shalt.err (!%p3162_p7)
}
  0x82   : > { %s3166_s16 = scalar_lea.vmem %s3577_s9, 4096  ;;  %s3317_s30 = smov [#allocation9]  }
  0x83   : > { %p3167_p11 = scmp.ne.s32.totalorder %s3577_s9, %s3166_s16  ;;  %s3171_s23 = sshll.u32 %s3317_s30, 4  ;;  %s3172_s23 = int_to_ptr.vmem [resolvable:$false] %s3171_s23 }
  0x84   : > { %s3173_s12 = scalar_lea.vmem %s3172_s23, 8192  ;;  %p3174_p13 = scmp.lt.s32.totalorder %s3577_s9, %s3172_s23 }
  0x85   : > { %p3169_p0 = pnand %p3167_p11, %p3544_p5  ;;  %p3175_p2 = scmp.lt.s32.totalorder %s3173_s12, %s3166_s16 }
  0x87   : > { %p3170_p1 = pneg %p3169_p0  ;;  %p3176_p6 = por %p3175_p2, %p3174_p13 }
  0x89   : > { %p3177_p9 = pnand %p3176_p6, %p3170_p1 }
  0x8b   : > { %3180 = shalt.err (!%p3177_p9)
}
  0x8c   : > { %s3318_s15 = smov 64   ;;  %s3319_s14 = smov 4  }
  0x8d   : > { %2834 = dma.hbm_to_vmem [thread:$0]  (!%p3521_p4), %s3573_s18, 4096, %s3577_s9, %s3538_s20, %s3318_s15, %s3318_s15, %s3319_s14  }
  0x8e   : > { %p4110_p5 = scmp.ne.s32.totalorder %s4108_s7, 0 }
  0x90   : > { %606 = sbr.rel (%p4110_p5) target bundleno = 3415 (0xd57), region = 80 }
  0x97   : > { %s3643_s24 = sand.u32 1, %s3285_s25   ;;  %p4111_p3 = scmp.ne.s32.totalorder %s4096_s19, 0 }
  0x98   : > { %s2815_s26 = smul.u32 192, %s3643_s24  ;;  %s609_s21 = scalar_lea.sflag [#allocation5], %s3643_s24 }
  0x9a   : > { %s3647_s6 = scalar_lea.vmem [#allocation4], %s2815_s26 }
  0x9b   : > { %3254 = dma.done.wait (%p4111_p3), %s609_s21, 3072  }
  0x9c   : > { %3256 = vsyncadd (%p4111_p3), %s609_s21, 4294964224  ;;  %s617_s7 = sand.u32 1, %s3466_s17   ;;  %s2521_s9 = sshll.u32 %s3643_s24, 8 }
  0x9d   : > { %s618_s20 = scalar_lea.sflag [#allocation8], %s617_s7  ;;  %s3655_s11 = scalar_lea.vmem [#allocation7], %s2521_s9 }
  0x9e   : > { %4112 = sst [smem:[#allocation30_spill]] %s3655_s11 }
  0x9f   : > { %3258 = dma.done.wait (%p4111_p3), %s618_s20, 8192  }
  0xa0   : > { %3260 = vsyncadd (%p4111_p3), %s618_s20, 4294959104  ;;  %p720_p4 = scmp.lt.s32.totalorder %s3297_s28, 1  ;;  %p723_p10 = scmp.lt.s32.totalorder %s3293_s27, 1 }
  0xa1   : > { %s4113_s4 = sld [smem:[#allocation34_spill]]  ;;  %s4115_s3 = sld [smem:[#allocation33_spill]] }
  0xa2   : > { %s3665_s29 = scalar_select %p720_p4, %s3297_s28, 1 }
  0xa3   : > { %s3668_s17 = scalar_select %p723_p10, %s3293_s27, 1 }
  0xa4   : > { %s4117_s25 = sld [smem:[#allocation37_spill]]  ;;  %s4119_s26 = sld [smem:[#allocation41_spill]] }
  0xa5   : > { %s2816_s16 = smul.u32 3, %s3668_s17  ;;  %s2649_s30 = sshll.u32 %s3668_s17, 6 }
  0xa6   : > { %s2525_s23 = sshll.u32 %s3668_s17, 2  ;;  %s4121_s13 = sld [smem:[#allocation43_spill]] }
  0xa7   : > { %s3679_s15 = scalar_lea.vmem %s4113_s4, %s2649_s30  ;;  %s3688_s20 = scalar_lea.vmem %s4115_s3, %s2816_s16 }
  0xa8   : > { %s4118_s4 = sld [smem:[#allocation39_spill]]  ;;  %s4120_s3 = sld [smem:[#allocation42_spill]] }
  0xa9   : > { %s3716_s2 = scalar_lea.vmem [#allocation9], %s2521_s9  ;;  %s4122_s10 = sand.u32 1, %s3273_s22  }
  0xaa   : > { %s740_s0 = scalar_lea.vmem %s4117_s25, %s3668_s17  ;;  %s747_s21 = scalar_lea.vmem %s4119_s26, %s3668_s17 }
  0xab   : > { %s3720_s25 = scalar_lea.vmem [#allocation10], %s4122_s10  ;;  %p2526_p8 = scmp.ne.s32.totalorder %s3293_s27, 0 }
  0xac   : > { %s753_s19 = scalar_lea.vmem %s4121_s13, %s3668_s17 }
  0xad   : > { %758 = sbr.rel (%p2526_p8) target bundleno = 192 (0xc0), region = 96 }
  0xae   : > { %s3702_s11 = scalar_lea.vmem %s4118_s4, %s2525_s23  ;;  %s750_s5 = scalar_lea.vmem %s4120_s3, %s3668_s17 }
  0xaf   : > { %s2527_s4 = sshll.u32 (!%p2526_p8), %s3297_s28, 3 }
  0xb4   : > { %s4123_s30 = sld [smem:[#allocation31_spill]] }
  0xba   : > { %s760_s12 = scalar_lea.vmem %s4123_s30, %s2527_s4 }
  0xbb   : > { %v793_v0 = vld [vmem:[%s760_s12] sm:$0xff] }
  0xbc   : > { %794 = vst [vmem:[#allocation2] sm:$0xff] %v793_v0 }
  0xbd   : > { %802 = vsyncadd [#allocation11], 128 }
  0xbe   : > { %3261 = dma.done.wait [#allocation11], 128 }
  0xbf   : > { %3262 = vsyncadd [#allocation11], 4294967168 }
  0xc0 PF: > { %v2941_v1 = vld [vmem:[%s3647_s6 + $0x4] ss:$12 sps:$4 sm:$0xff]   ;;  %v2943_v2 = vld [vmem:[%s3647_s6] ss:$12 sps:$4 sm:$0xff]   ;;  %v3320_v3 = vmov 0   ;;  %v3321_v4 = vmov 0.0   ;;  %v842_v29 = vlaneseq }
  0xc1   : > { %1017 = vmatprep.mubr.bf16.mxu0 %v3320_v3  ;;  %2729 = vmatprep.subr.bf16.mxu1 %v3321_v4  ;;  %v2944_v5 = vld [vmem:[%s3647_s6 + $0x1c] ss:$12 sps:$4 sm:$0xff]   ;;  %v2946_v6 = vld [vmem:[%s3647_s6 + $0x18] ss:$12 sps:$4 sm:$0xff]   ;;  %v2947_v7 = vld [vmem:[%s3647_s6 + $0x34] ss:$12 sps:$4 sm:$0xff]  }
  0xc2   : > { %985 = vmatprep.subr.bf16.mxu0 %v2941_v1  ;;  %v2949_v8 = vld [vmem:[%s3647_s6 + $0x30] ss:$12 sps:$4 sm:$0xff]   ;;  %v2950_v9 = vld [vmem:[%s3647_s6 + $0x4c] ss:$12 sps:$4 sm:$0xff]   ;;  %v2952_v10 = vld [vmem:[%s3647_s6 + $0x48] ss:$12 sps:$4 sm:$0xff]  }
  0xc3   : > { %986 = vmatpush1.bf16.msra.mxu0 %v2943_v2  ;;  %v2965_v11 = vld [vmem:[%s3647_s6 + $0x8] ss:$12 sps:$4 sm:$0xff]   ;;  %v2953_v12 = vld [vmem:[%s3647_s6 + $0x64] ss:$12 sps:$4 sm:$0xff]   ;;  %v2966_v13 = vld [vmem:[%s3647_s6 + $0x20] ss:$12 sps:$4 sm:$0xff]  }
  0xc4   : > { %987 = vmatprep.subr.bf16.mxu0 %v2944_v5  ;;  %2730 = vmatpush3.bf16.msra.mxu1 %v2965_v11  ;;  %v2955_v14 = vld [vmem:[%s3647_s6 + $0x60] ss:$12 sps:$4 sm:$0xff]   ;;  %v2956_v15 = vld [vmem:[%s3647_s6 + $0x7c] ss:$12 sps:$4 sm:$0xff]   ;;  %v2958_v16 = vld [vmem:[%s3647_s6 + $0x78] ss:$12 sps:$4 sm:$0xff]  }
  0xc5   : > { %2731 = vmatprep.subr.bf16.mxu1 %v3321_v4  ;;  %v2967_v17 = vld [vmem:[%s3647_s6 + $0x38] ss:$12 sps:$4 sm:$0xff]   ;;  %v2959_v18 = vld [vmem:[%s3647_s6 + $0x94] ss:$12 sps:$4 sm:$0xff]   ;;  %v2968_v19 = vld [vmem:[%s3647_s6 + $0x50] ss:$12 sps:$4 sm:$0xff]  }
  0xc6   : > { %v2961_v20 = vld [vmem:[%s3647_s6 + $0x90] ss:$12 sps:$4 sm:$0xff]   ;;  %v2962_v21 = vld [vmem:[%s3647_s6 + $0xac] ss:$12 sps:$4 sm:$0xff]   ;;  %v2969_v22 = vld [vmem:[%s3647_s6 + $0x68] ss:$12 sps:$4 sm:$0xff]  }
  0xc7   : > { %988 = vmatpush1.bf16.msra.mxu0 %v2946_v6  ;;  %v2964_v23 = vld [vmem:[%s3647_s6 + $0xa8] ss:$12 sps:$4 sm:$0xff]   ;;  %v2970_v25 = vld [vmem:[%s3647_s6 + $0x80] ss:$12 sps:$4 sm:$0xff]   ;;  %v2971_v27 = vld [vmem:[%s3647_s6 + $0x98] ss:$12 sps:$4 sm:$0xff]  }
  0xc8   : > { %989 = vmatprep.subr.bf16.mxu0 %v2947_v7  ;;  %2732 = vmatpush3.bf16.msra.mxu1 %v2966_v13  ;;  %v3753_v24 = vld [vmem:[#allocation2] sm:$0xff]  ;;  %vm3322_vm0 = vmmov 0   ;;  %v3772_v30 = vshrl.u32 %v842_v29, 7  ;;  %vm1077_vm1 = vcmask 523264   ;;  %s3323_s3 = smov 64   ;;  %vm1140_vm2 = vcmask 1043456  }
  0xc9   : > { %2733 = vmatprep.subr.bf16.mxu1 %v3321_v4  ;;  %v807_v26 = vpack.c.bf16 %v3753_v24, %v3753_v24  ;;  %v2972_v28 = vld [vmem:[%s3647_s6 + $0xb0] ss:$12 sps:$4 sm:$0xff]   ;;  %2745 = vmatprep.mubr.msk.bf16.mxu1 %vm3322_vm0, %v3321_v4  ;;  %vm1124_vm3 = vcmask 64512   ;;  %vm1302_vm4 = vcmask 1048064   ;;  %s4126_s24 = sld [smem:[#allocation35_spill]]  ;;  %s4128_s18 = sld [smem:[#allocation36_spill]] }
  0xca   : > { %v844_v31 = vsub.s32 0, %v3772_v30  ;;  %v840_v32 = vld [vmem:[%s3688_s20] sm:$0x7]  ;;  %v848_v33 = vsub.s32 1, %v3772_v30  ;;  %v852_v46 = vsub.s32 2, %v3772_v30  ;;  %s4124_s20 = scalar_lea.vmem %s4033_s1, %s3665_s29  ;;  %s4125_s29 = sld [smem:[#allocation30_spill]] }
  0xcb   : > { %990 = vmatpush1.bf16.msra.mxu0 %v2949_v8  ;;  %v2552_v55 = vld [vmem:[%s4124_s20] ss:$0 sm:$0xff]  ;;  %p2635_p12 = scmp.ne.s32.totalorder %s3293_s27, 1 }
  0xcc   : > { %991 = vmatprep.subr.bf16.mxu0 %v2950_v9  ;;  %2734 = vmatpush3.bf16.msra.mxu1 %v2967_v17  ;;  %v845_v34 = vrot.slane %v840_v32, %v844_v31  ;;  %v849_v35 = vrot.slane %v840_v32, %v848_v33  ;;  %v853_v47 = vrot.slane %v840_v32, %v852_v46  ;;  %vm3325_vm5 = vmmov (!%p2635_p12), 0  }
  0xcd   : > { %2735 = vmatprep.subr.bf16.mxu1 %v3321_v4 }
  0xcf   : > { %992 = vmatpush1.bf16.msra.mxu0 %v2952_v10  ;;  %s4127_s16 = scalar_lea.vmem %s4126_s24, %s3668_s17  ;;  %s4129_s13 = scalar_lea.vmem %s4128_s18, %s3668_s17 }
  0xd0   : > { %993 = vmatprep.subr.bf16.mxu0 %v2953_v12  ;;  %2736 = vmatpush3.bf16.msra.mxu1 %v2968_v19 }
  0xd1   : > { %2737 = vmatprep.subr.bf16.mxu1 %v3321_v4 }
  0xd3   : > { %994 = vmatpush1.bf16.msra.mxu0 %v2955_v14 }
  0xd4   : > { %995 = vmatprep.subr.bf16.mxu0 %v2956_v15  ;;  %2738 = vmatpush3.bf16.msra.mxu1 %v2969_v22 }
  0xd5   : > { %2739 = vmatprep.subr.bf16.mxu1 %v3321_v4 }
  0xd7   : > { %996 = vmatpush1.bf16.msra.mxu0 %v2958_v16 }
  0xd8   : > { %997 = vmatprep.subr.bf16.mxu0 %v2959_v18  ;;  %2740 = vmatpush3.bf16.msra.mxu1 %v2970_v25 }
  0xd9   : > { %2741 = vmatprep.subr.bf16.mxu1 %v3321_v4 }
  0xdb   : > { %998 = vmatpush1.bf16.msra.mxu0 %v2961_v20 }
  0xdc   : > { %999 = vmatprep.subr.bf16.mxu0 %v2962_v21  ;;  %2742 = vmatpush3.bf16.msra.mxu1 %v2971_v27 }
  0xdd   : > { %2743 = vmatprep.subr.bf16.mxu1 %v3321_v4 }
  0xdf   : > { %1000 = vmatpush1.bf16.msra.mxu0 %v2964_v23 }
  0xe0   : > { %2773 = vmatprep.subr.bf16.mxu0 %v3321_v4  ;;  %2744 = vmatpush3.bf16.msra.mxu1 %v2972_v28 }
  0xe1   : > { %2749 = vmatprep.subr.bf16.mxu1 %v3321_v4 }
  0xe2   : > { %1018 = vmatmul.mubr.bf16.vlgmr.msra.gmra.mrb[0].mxu0 %v807_v26 }
  0xe3   : > { %2789 = vmatprep.mubr.msk.bf16.mxu0 %vm3322_vm0, %v3321_v4  ;;  %2746 = vmatmul.mubr.bf16.vlgmr.msra.gmra.mrb[0].mxu1 %v807_v26 }
  0xe4   : > { %2751 = vmatprep.mubr.msk.bf16.mxu1 %vm3322_vm0, %v3321_v4 }
 0x1b5   : > { %v1019_v36 = vpop.f32.mrb[0].mxu0 }
 0x1b6   : > { %v1020_v37 = vadd.f32 %v1019_v36, %v845_v34  ;;  %v1021_v38 = vpop.f32.mrb[1].mxu0  ;;  %v1060_v48 = vpop.f32.mrb[0].mxu1 }
 0x1b7   : > { %v1022_v39 = vadd.f32 %v1021_v38, %v849_v35  ;;  %v1023_v40 = vpop.f32.mrb[2].mxu0  ;;  %v1061_v49 = vadd.f32 %v1060_v48, %v853_v47  ;;  %v2747_v50 = vpop.f32.mrb[1].mxu1  ;;  %v2974_v38 = vld [vmem:[%s3679_s15 + $0x8] sm:$0xff]  }
 0x1b8   : > { %v1024_v41 = vpop.f32.mrb[3].mxu0  ;;  %v1066_v42 = vmul.f32 0.125, %v1020_v37  ;;  %v1063_v51 = vpop.f32.mrb[2].mxu1  ;;  %v2973_v37 = vld [vmem:[%s3679_s15] sm:$0xff]   ;;  %v2976_v40 = vld [vmem:[%s3679_s15 + $0x18] sm:$0xff]  }
 0x1b9   : > { %v1068_v43 = vpack.c.bf16 %v1022_v39, %v1022_v39  ;;  %v1069_v52 = vpack.c.bf16 %v1061_v49, %v1061_v49  ;;  %v2748_v53 = vpop.f32.mrb[3].mxu1  ;;  %2774 = vmatpush3.bf16.msra.mxu0 %v2973_v37  ;;  %v2975_v39 = vld [vmem:[%s3679_s15 + $0x10] sm:$0xff]   ;;  %v2977_v41 = vld [vmem:[%s3679_s15 + $0x20] sm:$0xff]  }
 0x1ba   : > { %v1067_v45 = vpack.c.bf16 %v1066_v42, %v1066_v42  ;;  %2775 = vmatprep.subr.bf16.mxu0 %v3321_v4  ;;  %v2978_v42 = vld [vmem:[%s3679_s15 + $0x28] sm:$0xff]  }
 0x1bb   : > { %v1082_v44 = vsel %vm1077_vm1, %v1068_v43, 0  ;;  %1189 = vrot.lane.b32.xlu1 %v1068_v43, %s3323_s3  ;;  %v1142_v54 = vsel %vm1140_vm2, %v1069_v52, 0  ;;  %v2979_v43 = vld [vmem:[%s3679_s15 + $0x30] sm:$0xff]  }
 0x1bc   : > { %2750 = vmatpush3.bf16.xpose.msra.mxu1 %v1082_v44  ;;  %v2980_v44 = vld [vmem:[%s3679_s15 + $0x38] sm:$0xff]  }
 0x1bd   : > { %2755 = vmatprep.subr.bf16.mxu1 %v3321_v4  ;;  %2776 = vmatpush3.bf16.msra.mxu0 %v2974_v38 }
 0x1be   : > { %2777 = vmatprep.subr.bf16.mxu0 %v3321_v4 }
 0x1bf   : > { %1186 = vrot.lane.b32.xlu1 %v1067_v45, %s3323_s3 }
 0x1c1   : > { %2778 = vmatpush3.bf16.msra.mxu0 %v2975_v39  ;;  %v2566_v39 = vld [vmem:[%s4129_s13] ss:$0 sm:$0xff] }
 0x1c2   : > { %2779 = vmatprep.subr.bf16.mxu0 %v3321_v4 }
 0x1c3   : > { %2752 = vmatmul.mubr.msk.bf16.vlgmr.msra.gmra.mrb[4].mxu1 %vm1077_vm1, %v1067_v45 }
 0x1c4   : > { %2757 = vmatprep.mubr.msk.bf16.mxu1 %vm3322_vm0, %v3321_v4  ;;  %2756 = vmatpush3.bf16.msra.mxu1 %v1142_v54 }
 0x1c5   : > { %2761 = vmatprep.subr.bf16.mxu1 %v3321_v4  ;;  %2780 = vmatpush3.bf16.msra.mxu0 %v2976_v40 }
 0x1c6   : > { %2781 = vmatprep.subr.bf16.mxu0 %v3321_v4 }
 0x1c9   : > { %2782 = vmatpush3.bf16.msra.mxu0 %v2977_v41  ;;  %v2567_v41 = vld [vmem:[%s740_s0] ss:$0 sm:$0xff] }
 0x1ca   : > { %2783 = vmatprep.subr.bf16.mxu0 %v3321_v4 }
 0x1cd   : > { %2784 = vmatpush3.bf16.msra.mxu0 %v2978_v42 }
 0x1ce   : > { %2785 = vmatprep.subr.bf16.mxu0 %v3321_v4 }
 0x1d1   : > { %2786 = vmatpush3.bf16.msra.mxu0 %v2979_v43 }
 0x1d2   : > { %2787 = vmatprep.subr.bf16.mxu0 %v3321_v4 }
 0x1d5   : > { %2788 = vmatpush3.bf16.msra.mxu0 %v2980_v44 }
 0x22d   : > { %v1190_v8 = vpop.permute.xlu1 %1189 }
 0x22e   : > { %v1195_v10 = vsel %vm1077_vm1, %v1190_v8, 0 }
 0x231   : > { %v1187_v11 = vpop.permute.xlu1 %1186 }
 0x296   : > { %v1118_v56 = vpop.f32.mrb[4].mxu1 }
 0x297   : > { %v1119_v57 = vadd.f32 %v2552_v55, %v1118_v56  ;;  %v2753_v58 = vpop.f32.mrb[5].mxu1 }
 0x298   : > { %v1121_v59 = vpop.f32.mrb[6].mxu1 }
 0x299   : > { %v2754_v60 = vpop.f32.mrb[7].mxu1  ;;  %v1125_v61 = vsel %vm1124_vm3, %v1119_v57, -inf  ;;  %v2981_v59 = vld [vmem:[%s4125_s29] ss:$16 sps:$4 sm:$0xff]  }
 0x29a   : > { %1126 = vmax.xlane.f32.xlu0 %v1125_v61  ;;  %v2983_v60 = vld [vmem:[%s4125_s29 + $0x4] ss:$16 sps:$4 sm:$0xff]   ;;  %v2986_v61 = vld [vmem:[%s4125_s29 + $0xc] ss:$16 sps:$4 sm:$0xff]  }
 0x29b   : > { %1702 = vmatprep.subr.bf16.mxu0 %v2986_v61  ;;  %v3046_v61 = vld [vmem:[%s3716_s2 + $0xe0] sm:$0xff]  }
 0x327   : > { %v1127_v62 = vpop.xlane.xlu0 %1126 }
 0x328   : > { %v1128_v63 = vsub.f32 %v1119_v57, %v1127_v62  ;;  %v2989_v62 = vld [vmem:[%s4125_s29 + $0x24] ss:$16 sps:$4 sm:$0xff]  }
 0x32a   : > { %v1129_v0 = vmul.f32 1.442695, %v1128_v63  ;;  %v2992_v63 = vld [vmem:[%s4125_s29 + $0x2c] ss:$16 sps:$4 sm:$0xff]  }
 0x32c   : > { %3061 = vpow2.f32 %v1129_v0  ;;  %v2987_v0 = vld [vmem:[%s4125_s29 + $0x20] ss:$16 sps:$4 sm:$0xff]  }
 0x336   : > { %v3062_v1 = vpop.eup %3061 }
 0x337   : > { %v1131_v2 = vsel %vm1124_vm3, %v3062_v1, 0.0 }
 0x338   : > { %1132 = vadd.xlane.f32.xlu0 %v1131_v2  ;;  %v2995_v2 = vld [vmem:[%s4125_s29 + $0x44] ss:$16 sps:$4 sm:$0xff]  }
 0x3c5   : > { %v1133_v5 = vpop.xlane.xlu0 %1132 }
 0x3c6   : > { %3063 = vrcp.f32 %v1133_v5  ;;  %v2993_v5 = vld [vmem:[%s4125_s29 + $0x40] ss:$16 sps:$4 sm:$0xff]  }
 0x3d0   : > { %v3064_v6 = vpop.eup %3063 }
 0x3d1   : > { %v1135_v7 = vmul.f32 %v3064_v6, %v3062_v1  ;;  %v2990_v1 = vld [vmem:[%s4125_s29 + $0x28] ss:$16 sps:$4 sm:$0xff]  }
 0x3d2   : > { %v2996_v6 = vld [vmem:[%s4125_s29 + $0x48] ss:$16 sps:$4 sm:$0xff]  }
 0x3d3   : > { %v1136_v9 = vpack.c.bf16 %v1135_v7, %v1135_v7 }
 0x3d5   : > { %2758 = vmatmul.mubr.msk.bf16.vlgmr.msra.gmra.mrb[8].mxu1 %vm1124_vm3, %v1136_v9 }
 0x3d6   : > { %2762 = vmatpush3.bf16.xpose.msra.mxu1 %v1195_v10  ;;  %2763 = vmatprep.mubr.msk.bf16.mxu1 %vm3322_vm0, %v3321_v4 }
 0x3d7   : > { %2767 = vmatprep.subr.bf16.mxu1 %v3321_v4 }
 0x3dd   : > { %2764 = vmatmul.mubr.msk.bf16.vlgmr.msra.gmra.mrb[12].mxu1 %vm1077_vm1, %v1187_v11  ;;  %v3001_v11 = vld [vmem:[%s4125_s29 + $0x64] ss:$16 sps:$4 sm:$0xff]  }
 0x3de   : > { %2769 = vmatprep.mubr.msk.bf16.mxu1 %vm3322_vm0, %v3321_v4  ;;  %v2557_v4 = vld [vmem:[%s4127_s16] ss:$0 sm:$0xff] }
 0x4a8   : > { %v1178_v12 = vpop.f32.mrb[8].mxu1 }
 0x4a9   : > { %1184 = vst.msk [vmem:[#allocation3] sm:$0xff] %vm1077_vm1, %v1178_v12  ;;  %v2759_v13 = vpop.f32.mrb[9].mxu1  ;;  %v3004_v12 = vld [vmem:[%s4125_s29 + $0x6c] ss:$16 sps:$4 sm:$0xff]  }
 0x4aa   : > { %v1181_v14 = vpop.f32.mrb[10].mxu1  ;;  %v2999_v13 = vld [vmem:[%s4125_s29 + $0x60] ss:$16 sps:$4 sm:$0xff]  }
 0x4ab   : > { %v2760_v15 = vpop.f32.mrb[11].mxu1  ;;  %v3002_v14 = vld [vmem:[%s4125_s29 + $0x68] ss:$16 sps:$4 sm:$0xff]  }
 0x4ac   : > { %v3007_v15 = vld [vmem:[%s4125_s29 + $0x84] ss:$16 sps:$4 sm:$0xff]  }
 0x4b0   : > { %v1231_v16 = vpop.f32.mrb[12].mxu1 }
 0x4b1   : > { %v1232_v17 = vadd.f32 %v2552_v55, %v1231_v16  ;;  %v2765_v18 = vpop.f32.mrb[13].mxu1  ;;  %v3010_v16 = vld [vmem:[%s4125_s29 + $0x8c] ss:$16 sps:$4 sm:$0xff]  }
 0x4b2   : > { %v1234_v19 = vpop.f32.mrb[14].mxu1  ;;  %v3008_v18 = vld [vmem:[%s4125_s29 + $0x88] ss:$16 sps:$4 sm:$0xff]  }
 0x4b3   : > { %v2766_v20 = vpop.f32.mrb[15].mxu1  ;;  %v1237_v21 = vsel %vm1124_vm3, %v1232_v17, -inf  ;;  %v3013_v19 = vld [vmem:[%s4125_s29 + $0xa4] ss:$16 sps:$4 sm:$0xff]  }
 0x4b4   : > { %1238 = vmax.xlane.f32.xlu0 %v1237_v21  ;;  %v3016_v20 = vld [vmem:[%s4125_s29 + $0xac] ss:$16 sps:$4 sm:$0xff]   ;;  %v3011_v21 = vld [vmem:[%s4125_s29 + $0xa0] ss:$16 sps:$4 sm:$0xff]  }
 0x4ca   : > { %1250 = vrot.lane.b32.xlu0 %v1069_v52, %s3323_s3 }
 0x541   : > { %v1239_v22 = vpop.xlane.xlu0 %1238 }
 0x542   : > { %v1240_v23 = vsub.f32 %v1232_v17, %v1239_v22  ;;  %v3005_v17 = vld [vmem:[%s4125_s29 + $0x80] ss:$16 sps:$4 sm:$0xff]   ;;  %v3014_v22 = vld [vmem:[%s4125_s29 + $0xa8] ss:$16 sps:$4 sm:$0xff]  }
 0x544   : > { %v1241_v25 = vmul.f32 1.442695, %v1240_v23  ;;  %v3019_v23 = vld [vmem:[%s4125_s29 + $0xc4] ss:$16 sps:$4 sm:$0xff]  }
 0x545   : > { %v1251_v26 = vpop.permute.xlu0 %1250 }
 0x546   : > { %3065 = vpow2.f32 %v1241_v25  ;;  %v1256_v27 = vsel %vm1140_vm2, %v1251_v26, 0  ;;  %v3022_v25 = vld [vmem:[%s4125_s29 + $0xcc] ss:$16 sps:$4 sm:$0xff]   ;;  %v3017_v26 = vld [vmem:[%s4125_s29 + $0xc0] ss:$16 sps:$4 sm:$0xff]  }
 0x547   : > { %2768 = vmatpush3.bf16.msra.mxu1 %v1256_v27  ;;  %v3020_v27 = vld [vmem:[%s4125_s29 + $0xc8] ss:$16 sps:$4 sm:$0xff]  }
 0x548   : > { %1661 = vmatprep.subr.bf16.mxu1 %v2983_v60  ;;  %v3044_v60 = vld [vmem:[%s3716_s2 + $0x98] sm:$0xff]  }
 0x550   : > { %v3066_v28 = vpop.eup %3065 }
 0x551   : > { %v1243_v29 = vsel %vm1124_vm3, %v3066_v28, 0.0 }
 0x552   : > { %1244 = vadd.xlane.f32.xlu1 %v1243_v29  ;;  %v3028_v29 = vld [vmem:[%s4125_s29 + $0xec] ss:$16 sps:$4 sm:$0xff]  }
 0x5df   : > { %v1245_v32 = vpop.xlane.xlu1 %1244 }
 0x5e0   : > { %3067 = vrcp.f32 %v1245_v32  ;;  %v3023_v32 = vld [vmem:[%s4125_s29 + $0xe0] ss:$16 sps:$4 sm:$0xff]  }
 0x5ea   : > { %v3068_v34 = vpop.eup %3067 }
 0x5eb   : > { %v1247_v35 = vmul.f32 %v3068_v34, %v3066_v28  ;;  %v3025_v28 = vld [vmem:[%s4125_s29 + $0xe4] ss:$16 sps:$4 sm:$0xff]   ;;  %v3026_v34 = vld [vmem:[%s4125_s29 + $0xe8] ss:$16 sps:$4 sm:$0xff]  }
 0x5ed   : > { %v1248_v36 = vpack.c.bf16 %v1247_v35, %v1247_v35 }
 0x5ef   : > { %2770 = vmatmul.mubr.msk.bf16.vlgmr.msra.gmra.mrb[16].mxu1 %vm1124_vm3, %v1248_v36 }
 0x5f0   : > { %1693 = vmatprep.mubr.bf16.mxu1 %v3320_v3  ;;  %1662 = vmatpush1.bf16.msra.mxu1 %v2981_v59  ;;  %v3043_v59 = vld [vmem:[%s3716_s2 + $0x18] sm:$0xff]  }
 0x5f1   : > { %1663 = vmatprep.subr.bf16.mxu1 %v2989_v62  ;;  %v3047_v62 = vld [vmem:[%s3716_s2 + $0x20] sm:$0xff]  }
 0x5f4   : > { %1664 = vmatpush1.bf16.msra.mxu1 %v2987_v0  ;;  %v3049_v0 = vld [vmem:[%s3716_s2 + $0x68] sm:$0xff]  }
 0x5f5   : > { %1665 = vmatprep.subr.bf16.mxu1 %v2995_v2  ;;  %v3051_v2 = vld [vmem:[%s3716_s2 + $0x28] sm:$0xff]  }
 0x5f8   : > { %1666 = vmatpush1.bf16.msra.mxu1 %v2993_v5  ;;  %v3053_v5 = vld [vmem:[%s3716_s2 + $0x70] sm:$0xff]  }
 0x5f9   : > { %1667 = vmatprep.subr.bf16.mxu1 %v3001_v11  ;;  %v3059_v11 = vld [vmem:[%s3716_s2 + $0x38] sm:$0xff]  }
 0x5fc   : > { %1668 = vmatpush1.bf16.msra.mxu1 %v2999_v13  ;;  %v1479_v13 = vld [vmem:[%s3702_s11] sm:$0xf] }
 0x5fd   : > { %1669 = vmatprep.subr.bf16.mxu1 %v3007_v15  ;;  %v1484_v15 = vrot.slane %v1479_v13, %v844_v31 }
 0x600   : > { %1670 = vmatpush1.bf16.msra.mxu1 %v3005_v17  ;;  %v1488_v17 = vrot.slane %v1479_v13, %v848_v33 }
 0x601   : > { %1671 = vmatprep.subr.bf16.mxu1 %v3013_v19 }
 0x604   : > { %1672 = vmatpush1.bf16.msra.mxu1 %v3011_v21 }
 0x605   : > { %1673 = vmatprep.subr.bf16.mxu1 %v3019_v23 }
 0x608   : > { %1674 = vmatpush1.bf16.msra.mxu1 %v3017_v26 }
 0x609   : > { %1675 = vmatprep.subr.bf16.mxu1 %v3025_v28 }
 0x60c   : > { %1676 = vmatpush1.bf16.msra.mxu1 %v3023_v32 }
 0x6c2   : > { %v1292_v45 = vpop.f32.mrb[16].mxu1 }
 0x6c3   : > { %1299 = vrot.lane.b32.xlu0 %v1292_v45, %s3323_s3  ;;  %v2771_v47 = vpop.f32.mrb[17].mxu1  ;;  %v3029_v45 = vld [vmem:[%s3716_s2 + $0x40] sm:$0xff]  }
 0x6c4   : > { %v1295_v48 = vpop.f32.mrb[18].mxu1  ;;  %v3030_v47 = vld [vmem:[%s3716_s2 + $0xc0] sm:$0xff]   ;;  %2676 = vmatprep.subr.bf16.mxu1 %v3029_v45 }
 0x6c5   : > { %v2772_v49 = vpop.f32.mrb[19].mxu1  ;;  %v3031_v48 = vld [vmem:[%s3716_s2] sm:$0xff]  }
 0x6c6   : > { %v3032_v49 = vld [vmem:[%s3716_s2 + $0x80] sm:$0xff]  }
 0x735   : > { %v1300_v50 = vpop.permute.xlu0 %1299 }
 0x736   : > { %1303 = vst.msk [vmem:[#allocation3] sm:$0xff] %vm1302_vm4, %v1300_v50  ;;  %v3033_v50 = vld [vmem:[%s3716_s2 + $0x48] sm:$0xff]  }
 0x73d   : > { %v1304_v51 = vld [vmem:[#allocation3] sm:$0xff] }
 0x73e   : > { %v1305_v52 = vpack.c.bf16 %v1304_v51, %v1304_v51  ;;  %v3034_v51 = vld [vmem:[%s3716_s2 + $0xc8] sm:$0xff]  }
 0x740   : > { %2790 = vmatmul.mubr.bf16.vlgmr.msra.gmra.mrb[4].mxu0 %v1305_v52  ;;  %v3035_v52 = vld [vmem:[%s3716_s2 + $0x8] sm:$0xff]  }
 0x741   : > { %1734 = vmatprep.mubr.bf16.mxu0 %v3320_v3  ;;  %v2984_v3 = vld [vmem:[%s4125_s29 + $0x8] ss:$16 sps:$4 sm:$0xff]  }
 0x742   : > { %1703 = vmatpush1.bf16.msra.mxu0 %v2984_v3  ;;  %v3045_v3 = vld [vmem:[%s3716_s2 + $0x60] sm:$0xff]  }
 0x743   : > { %1704 = vmatprep.subr.bf16.mxu0 %v2992_v63  ;;  %v3048_v63 = vld [vmem:[%s3716_s2 + $0xa0] sm:$0xff]  }
 0x746   : > { %1705 = vmatpush1.bf16.msra.mxu0 %v2990_v1  ;;  %v3050_v1 = vld [vmem:[%s3716_s2 + $0xe8] sm:$0xff]  }
 0x813   : > { %v1411_v53 = vpop.f32.mrb[4].mxu0 }
 0x814   : > { %v1412_v54 = vadd.f32 %v2557_v4, %v1411_v53  ;;  %v2791_v55 = vpop.f32.mrb[5].mxu0  ;;  %v3036_v4 = vld [vmem:[%s3716_s2 + $0x88] sm:$0xff]   ;;  %v3037_v53 = vld [vmem:[%s3716_s2 + $0x50] sm:$0xff]  }
 0x815   : > { %v1414_v56 = vpop.f32.mrb[6].mxu0  ;;  %v3039_v55 = vld [vmem:[%s3716_s2 + $0x10] sm:$0xff]  }
 0x816   : > { %v2792_v57 = vpop.f32.mrb[7].mxu0  ;;  %v1417_v58 = vadd.f32 %v1412_v54, %v3753_v24  ;;  %v2998_v24 = vld [vmem:[%s4125_s29 + $0x4c] ss:$16 sps:$4 sm:$0xff]   ;;  %v3038_v54 = vld [vmem:[%s3716_s2 + $0xd0] sm:$0xff]   ;;  %s4134_s29 = sld [smem:[#allocation44_spill]] (!%p2635_p12) }
 0x817   : > { %1706 = vmatprep.subr.bf16.mxu0 %v2998_v24  ;;  %v3040_v56 = vld [vmem:[%s3716_s2 + $0x90] sm:$0xff]   ;;  %v3041_v57 = vld [vmem:[%s3716_s2 + $0x58] sm:$0xff]   ;;  %v3052_v24 = vld [vmem:[%s3716_s2 + $0xa8] sm:$0xff]  }
 0x818   : > { %1420 = vadd.xlane.f32.xlu0 %v1417_v58  ;;  %1707 = vmatpush1.bf16.msra.mxu0 %v2996_v6  ;;  %v3054_v6 = vld [vmem:[%s3716_s2 + $0xf0] sm:$0xff]  }
 0x819   : > { %1708 = vmatprep.subr.bf16.mxu0 %v3004_v12  ;;  %v3060_v12 = vld [vmem:[%s3716_s2 + $0xb8] sm:$0xff]  }
 0x81c   : > { %1709 = vmatpush1.bf16.msra.mxu0 %v3002_v14  ;;  %v1495_v14 = vsub.s32 3, %v3772_v30  ;;  %s4135_s15 = smov (!%p2635_p12), %s4134_s29 }
 0x81d   : > { %1710 = vmatprep.subr.bf16.mxu0 %v3010_v16  ;;  %v1492_v16 = vrot.slane %v1479_v13, %v852_v46 }
 0x820   : > { %1711 = vmatpush1.bf16.msra.mxu0 %v3008_v18  ;;  %v1496_v18 = vrot.slane %v1479_v13, %v1495_v14 }
 0x821   : > { %1712 = vmatprep.subr.bf16.mxu0 %v3016_v20 }
 0x824   : > { %1713 = vmatpush1.bf16.msra.mxu0 %v3014_v22 }
 0x825   : > { %1714 = vmatprep.subr.bf16.mxu0 %v3022_v25 }
 0x828   : > { %1715 = vmatpush1.bf16.msra.mxu0 %v3020_v27 }
 0x829   : > { %1716 = vmatprep.subr.bf16.mxu0 %v3028_v29 }
 0x82c   : > { %1717 = vmatpush1.bf16.msra.mxu0 %v3026_v34 }
 0x82d   : > { %2698 = vmatprep.subr.bf16.mxu0 %v3030_v47 }
 0x8a5   : > { %v1421_v7 = vpop.xlane.xlu0 %1420 }
 0x8a6   : > { %v1423_v8 = vmul.f32 0.0078125, %v1421_v7  ;;  %v3055_v7 = vld [vmem:[%s3716_s2 + $0x30] sm:$0xff]  }
 0x8a8   : > { %v1424_v9 = vsub.f32 %v1417_v58, %v1423_v8  ;;  %v3042_v58 = vld [vmem:[%s3716_s2 + $0xd8] sm:$0xff]   ;;  %v3056_v8 = vld [vmem:[%s3716_s2 + $0xb0] sm:$0xff]  }
 0x8aa   : > { %v1425_v10 = vmul.f32 %v1424_v9, %v1424_v9 }
 0x8ac   : > { %1426 = vadd.xlane.f32.xlu1 %v1425_v10  ;;  %v3058_v10 = vld [vmem:[%s3716_s2 + $0xf8] sm:$0xff]  }
 0x939   : > { %v1427_v35 = vpop.xlane.xlu1 %1426 }
 0x93a   : > { %v1428_v36 = vmul.f32 0.0078125, %v1427_v35 }
 0x93c   : > { %v1429_v37 = vadd.f32 1e-12, %v1428_v36 }
 0x93e   : > { %3069 = vrsqrt.f32 %v1429_v37 }
 0x948   : > { %v3070_v38 = vpop.eup %3069 }
 0x949   : > { %v1431_v40 = vmul.f32 %v3070_v38, %v1424_v9  ;;  %v3057_v9 = vld [vmem:[%s3716_s2 + $0x78] sm:$0xff]   ;;  %s4136_s2 = sld [smem:[#allocation45_spill]] (!%p2635_p12) }
 0x94b   : > { %v1438_v42 = vmul.f32 %v2566_v39, %v1431_v40 }
 0x94d   : > { %v3880_v43 = vadd.f32 %v2567_v41, %v1438_v42 }
 0x94f   : > { %v1446_v44 = vpack.c.bf16 %v3880_v43, %v3880_v43 }
 0x951   : > { %1694 = vmatmul.mubr.bf16.vlgmr.msra.gmra.mrb[20].mxu1 %v1446_v44  ;;  %1735 = vmatmul.mubr.bf16.vlgmr.msra.gmra.mrb[8].mxu0 %v1446_v44 }
 0x952   : > { %2677 = vmatpush3.bf16.msra.mxu1 %v3031_v48  ;;  %2699 = vmatpush3.bf16.msra.mxu0 %v3032_v49 }
 0x953   : > { %2678 = vmatprep.subr.bf16.mxu1 %v3033_v50  ;;  %2700 = vmatprep.subr.bf16.mxu0 %v3034_v51 }
 0x956   : > { %2679 = vmatpush3.bf16.msra.mxu1 %v3035_v52  ;;  %2701 = vmatpush3.bf16.msra.mxu0 %v3036_v4 }
 0x957   : > { %2680 = vmatprep.subr.bf16.mxu1 %v3037_v53  ;;  %2702 = vmatprep.subr.bf16.mxu0 %v3038_v54 }
 0x95a   : > { %2681 = vmatpush3.bf16.msra.mxu1 %v3039_v55  ;;  %2703 = vmatpush3.bf16.msra.mxu0 %v3040_v56 }
 0x95b   : > { %2682 = vmatprep.subr.bf16.mxu1 %v3041_v57  ;;  %2704 = vmatprep.subr.bf16.mxu0 %v3042_v58 }
 0x95e   : > { %2683 = vmatpush3.bf16.msra.mxu1 %v3043_v59  ;;  %2705 = vmatpush3.bf16.msra.mxu0 %v3044_v60 }
 0x95f   : > { %2684 = vmatprep.subr.bf16.mxu1 %v3045_v3  ;;  %2706 = vmatprep.subr.bf16.mxu0 %v3046_v61 }
 0x962   : > { %2685 = vmatpush3.bf16.msra.mxu1 %v3047_v62  ;;  %2707 = vmatpush3.bf16.msra.mxu0 %v3048_v63 }
 0x963   : > { %2686 = vmatprep.subr.bf16.mxu1 %v3049_v0  ;;  %2708 = vmatprep.subr.bf16.mxu0 %v3050_v1 }
 0x966   : > { %2687 = vmatpush3.bf16.msra.mxu1 %v3051_v2  ;;  %2709 = vmatpush3.bf16.msra.mxu0 %v3052_v24 }
 0x967   : > { %2688 = vmatprep.subr.bf16.mxu1 %v3053_v5  ;;  %2710 = vmatprep.subr.bf16.mxu0 %v3054_v6 }
 0x96a   : > { %2689 = vmatpush3.bf16.msra.mxu1 %v3055_v7  ;;  %2711 = vmatpush3.bf16.msra.mxu0 %v3056_v8 }
 0x96b   : > { %2690 = vmatprep.subr.bf16.mxu1 %v3057_v9  ;;  %2712 = vmatprep.subr.bf16.mxu0 %v3058_v10  ;;  %v2600_v10 = vld [vmem:[%s747_s21] ss:$0 sm:$0xff] }
 0x96e   : > { %2691 = vmatpush3.bf16.msra.mxu1 %v3059_v11  ;;  %2713 = vmatpush3.bf16.msra.mxu0 %v3060_v12 }
 0xa24   : > { %v1695_v19 = vpop.f32.mrb[20].mxu1  ;;  %v1736_v20 = vpop.f32.mrb[8].mxu0 }
 0xa25   : > { %v1696_v21 = vadd.f32 %v1695_v19, %v1484_v15  ;;  %v1737_v22 = vadd.f32 %v1736_v20, %v1492_v16  ;;  %v1697_v23 = vpop.f32.mrb[21].mxu1  ;;  %v1738_v25 = vpop.f32.mrb[9].mxu0 }
 0xa26   : > { %v1698_v26 = vadd.f32 %v1697_v23, %v1488_v17  ;;  %v1739_v27 = vadd.f32 %v1738_v25, %v1496_v18  ;;  %v1699_v28 = vpop.f32.mrb[22].mxu1  ;;  %v1740_v29 = vpop.f32.mrb[10].mxu0 }
 0xa27   : > { %v1747_v32 = vmul.f32 0.044715, %v1696_v21  ;;  %v1749_v34 = vmul.f32 0.044715, %v1737_v22  ;;  %v1700_v31 = vpop.f32.mrb[23].mxu1  ;;  %v1741_v35 = vpop.f32.mrb[11].mxu0 }
 0xa28   : > { %v1748_v36 = vmul.f32 0.044715, %v1698_v26  ;;  %v1750_v46 = vmul.f32 0.044715, %v1739_v27  ;;  %v1743_v54 = vmul.f32 0.5, %v1696_v21  ;;  %v1744_v57 = vmul.f32 0.5, %v1698_v26 }
 0xa29   : > { %v1751_v37 = vmul.f32 %v1747_v32, %v1696_v21  ;;  %v1753_v30 = vmul.f32 %v1749_v34, %v1737_v22  ;;  %v1746_v60 = vmul.f32 0.5, %v1739_v27  ;;  %v1745_v63 = vmul.f32 0.5, %v1737_v22  ;;  %v2633_v34 = vld [vmem:[%s750_s5] ss:$0 sm:$0xff] }
 0xa2a   : > { %v1752_v33 = vmul.f32 %v1748_v36, %v1698_v26  ;;  %v1754_v38 = vmul.f32 %v1750_v46, %v1739_v27  ;;  %v3081_v46 = vld [vmem:[%s4134_s29] sm:$0xff] (!%p2635_p12)  }
 0xa2b   : > { %v1755_v39 = vmul.f32 %v1751_v37, %v1696_v21  ;;  %v1757_v40 = vmul.f32 %v1753_v30, %v1737_v22  ;;  %v3324_v37 = vmov (!%p2635_p12), 0.0   ;;  %v3082_v30 = vld [vmem:[%s4135_s15 + $0x8] sm:$0xff] (!%p2635_p12)  }
 0xa2c   : > { %v1756_v41 = vmul.f32 %v1752_v33, %v1698_v26  ;;  %v1758_v42 = vmul.f32 %v1754_v38, %v1739_v27  ;;  %2793 = vmatprep.subr.bf16.mxu0 (!%p2635_p12), %v3324_v37  ;;  %v3083_v33 = vld [vmem:[%s4135_s15 + $0x10] sm:$0xff] (!%p2635_p12)   ;;  %v3084_v38 = vld [vmem:[%s4135_s15 + $0x18] sm:$0xff] (!%p2635_p12)  }
 0xa2d   : > { %v1759_v44 = vadd.f32 %v1755_v39, %v1696_v21  ;;  %v1761_v45 = vadd.f32 %v1757_v40, %v1737_v22  ;;  %v3085_v39 = vld [vmem:[%s4135_s15 + $0x20] sm:$0xff] (!%p2635_p12)   ;;  %v3086_v40 = vld [vmem:[%s4135_s15 + $0x28] sm:$0xff] (!%p2635_p12)  }
 0xa2e   : > { %v1760_v47 = vadd.f32 %v1756_v41, %v1698_v26  ;;  %v1762_v48 = vadd.f32 %v1758_v42, %v1739_v27  ;;  %v3087_v41 = vld [vmem:[%s4135_s15 + $0x30] sm:$0xff] (!%p2635_p12)   ;;  %v3088_v42 = vld [vmem:[%s4135_s15 + $0x38] sm:$0xff] (!%p2635_p12)  }
 0xa2f   : > { %v1763_v49 = vmul.f32 0.7978846, %v1759_v44  ;;  %v1765_v52 = vmul.f32 0.7978846, %v1761_v45  ;;  %v2176_v45 = vld [vmem:[%s4136_s2] sm:$0x1] (!%p2635_p12) }
 0xa30   : > { %v1764_v50 = vmul.f32 0.7978846, %v1760_v47  ;;  %v1766_v51 = vmul.f32 0.7978846, %v1762_v48 }
 0xa31   : > { %3071 = vtanh.f32 %v1763_v49 }
 0xa32   : > { %3073 = vtanh.f32 %v1764_v50 }
 0xa33   : > { %3075 = vtanh.f32 %v1766_v51 }
 0xa34   : > { %3077 = vtanh.f32 %v1765_v52 }
 0xa3b   : > { %v3072_v4 = vpop.eup %3071 }
 0xa3c   : > { %v3074_v53 = vpop.eup %3073  ;;  %v1771_v55 = vadd.f32 1.0, %v3072_v4 }
 0xa3d   : > { %v3076_v56 = vpop.eup %3075  ;;  %v1772_v58 = vadd.f32 1.0, %v3074_v53 }
 0xa3e   : > { %v3078_v59 = vpop.eup %3077  ;;  %v1774_v3 = vadd.f32 1.0, %v3076_v56  ;;  %v1775_v61 = vmul.f32 %v1771_v55, %v1743_v54 }
 0xa3f   : > { %v1776_v62 = vmul.f32 %v1772_v58, %v1744_v57  ;;  %v1773_v0 = vadd.f32 1.0, %v3078_v59 }
 0xa40   : > { %v1778_v1 = vmul.f32 %v1774_v3, %v1746_v60  ;;  %v1779_v6 = vpack.c.bf16 %v1775_v61, %v1775_v61 }
 0xa41   : > { %v1780_v2 = vpack.c.bf16 %v1776_v62, %v1776_v62  ;;  %v1777_v24 = vmul.f32 %v1773_v0, %v1745_v63 }
 0xa42   : > { %v1782_v5 = vpack.c.bf16 %v1778_v1, %v1778_v1 }
 0xa43   : > { %2078 = vmatprep.mubr.bf16.mxu1 %v1780_v2  ;;  %v1781_v7 = vpack.c.bf16 %v1777_v24, %v1777_v24 }
 0xa44   : > { %2118 = vmatprep.mubr.bf16.mxu0 %v1782_v5  ;;  %2079 = vmatmul.mubr.bf16.vlgmr.msra.gmra.mrb[24].mxu1 %v1779_v6 }
 0xa45   : > { %2119 = vmatmul.mubr.bf16.vlgmr.msra.gmra.mrb[12].mxu0 %v1781_v7 }
 0xa46   : > { %2794 = vmatpush3.bf16.msra.mxu0 (!%p2635_p12), %v3081_v46  ;;  %2809 = vmatprep.mubr.msk.bf16.mxu0 (!%p2635_p12), %vm3325_vm5, %v3324_v37 }
 0xa47   : > { %2795 = vmatprep.subr.bf16.mxu0 (!%p2635_p12), %v3324_v37 }
 0xa4a   : > { %2796 = vmatpush3.bf16.msra.mxu0 (!%p2635_p12), %v3082_v30 }
 0xa4b   : > { %2797 = vmatprep.subr.bf16.mxu0 (!%p2635_p12), %v3324_v37 }
 0xa4e   : > { %2798 = vmatpush3.bf16.msra.mxu0 (!%p2635_p12), %v3083_v33 }
 0xa4f   : > { %2799 = vmatprep.subr.bf16.mxu0 (!%p2635_p12), %v3324_v37 }
 0xa52   : > { %2800 = vmatpush3.bf16.msra.mxu0 (!%p2635_p12), %v3084_v38 }
 0xa53   : > { %2801 = vmatprep.subr.bf16.mxu0 (!%p2635_p12), %v3324_v37 }
 0xa56   : > { %2802 = vmatpush3.bf16.msra.mxu0 (!%p2635_p12), %v3085_v39 }
 0xa57   : > { %2803 = vmatprep.subr.bf16.mxu0 (!%p2635_p12), %v3324_v37 }
 0xa5a   : > { %2804 = vmatpush3.bf16.msra.mxu0 (!%p2635_p12), %v3086_v40 }
 0xa5b   : > { %2805 = vmatprep.subr.bf16.mxu0 (!%p2635_p12), %v3324_v37 }
 0xa5e   : > { %2806 = vmatpush3.bf16.msra.mxu0 (!%p2635_p12), %v3087_v41 }
 0xa5f   : > { %2807 = vmatprep.subr.bf16.mxu0 (!%p2635_p12), %v3324_v37 }
 0xa62   : > { %2808 = vmatpush3.bf16.msra.mxu0 (!%p2635_p12), %v3088_v42 }
 0xb17   : > { %v2692_v8 = vpop.f32.mrb[24].mxu1 }
 0xb18   : > { %v2714_v9 = vpop.f32.mrb[12].mxu0  ;;  %v2693_v11 = vpop.f32.mrb[25].mxu1 }
 0xb19   : > { %v2694_v12 = vadd.f32 %v2693_v11, %v2692_v8  ;;  %v2715_v13 = vpop.f32.mrb[13].mxu0  ;;  %v2695_v14 = vpop.f32.mrb[26].mxu1 }
 0xb1a   : > { %v2716_v15 = vadd.f32 %v2715_v13, %v2714_v9  ;;  %v2717_v16 = vpop.f32.mrb[14].mxu0  ;;  %v2696_v17 = vpop.f32.mrb[27].mxu1 }
 0xb1b   : > { %v2081_v18 = vadd.f32 %v2694_v12, %v2600_v10  ;;  %v2718_v19 = vpop.f32.mrb[15].mxu0 }
 0xb1d   : > { %v2121_v20 = vadd.f32 %v2716_v15, %v2081_v18 }
 0xb1f   : > { %v2126_v21 = vadd.f32 %v2121_v20, %v3880_v43  ;;  %v2634_v43 = vld [vmem:[%s753_s19] ss:$0 sm:$0xff] }
 0xb21   : > { %2129 = vadd.xlane.f32.xlu1 %v2126_v21 }
 0xbae   : > { %v2130_v22 = vpop.xlane.xlu1 %2129 }
 0xbaf   : > { %v2131_v23 = vmul.f32 0.0078125, %v2130_v22 }
 0xbb1   : > { %v2132_v25 = vsub.f32 %v2126_v21, %v2131_v23 }
 0xbb3   : > { %v2133_v26 = vmul.f32 %v2132_v25, %v2132_v25 }
 0xbb5   : > { %2134 = vadd.xlane.f32.xlu1 %v2133_v26 }
 0xc42   : > { %v2135_v27 = vpop.xlane.xlu1 %2134 }
 0xc43   : > { %v2136_v28 = vmul.f32 0.0078125, %v2135_v27 }
 0xc45   : > { %v2137_v29 = vadd.f32 1e-12, %v2136_v28 }
 0xc47   : > { %3079 = vrsqrt.f32 %v2137_v29 }
 0xc51   : > { %v3080_v32 = vpop.eup %3079 }
 0xc52   : > { %v2139_v31 = vmul.f32 %v3080_v32, %v2132_v25  ;;  %2158 = sbr.rel (%p2635_p12) target bundleno = 3388 (0xd3c), region = 135 }
 0xc54   : > { %v2146_v35 = vmul.f32 %v2633_v34, %v2139_v31 }
 0xc56   : > { %v2153_v36 = vadd.f32 %v2634_v43, %v2146_v35 }
 0xc58   : > { %2154 = vst [vmem:[#allocation2] sm:$0xff] %v2153_v36  ;;  %v2159_v44 = vpack.c.bf16 (!%p2635_p12), %v2153_v36, %v2153_v36 }
 0xc5a   : > { %2810 = vmatmul.mubr.bf16.vlgmr.msra.gmra.mrb[0].mxu0 %v2159_v44 }
 0xd2d   : > { %v2259_v47 = vpop.f32.mrb[0].mxu0 }
 0xd2e   : > { %v2260_v48 = vadd.f32 %v2259_v47, %v2176_v45  ;;  %v2811_v49 = vpop.f32.mrb[1].mxu0 }
 0xd2f   : > { %v2262_v50 = vpop.f32.mrb[2].mxu0 }
 0xd30   : > { %3089 = vtanh.f32 %v2260_v48  ;;  %v2812_v51 = vpop.f32.mrb[3].mxu0 }
 0xd3a   : > { %v3090_v52 = vpop.eup %3089 }
 0xd3b   : > { %2266 = vst [vmem:[%s3720_s25] sm:$0x1] %v3090_v52 }
 0xd3c PF: > { %s4137_s21 = sld [smem:[#allocation28_spill]]  ;;  %s2644_s26 = sshll.u32 %s3297_s28, 4 }
 0xd3d   : > { %s4138_s3 = sld [smem:[#allocation46_spill]]  ;;  %s2280_s9 = sshll.u32 %s3720_s25, 4  ;;  %s2281_s9 = int_to_ptr.vmem [resolvable:$true] %s2280_s9 }
 0xd3e   : > { %s4139_s20 = sand.u32 1, %s3273_s22   ;;  %s3181_s5 = scalar_lea.vmem %s2281_s9, 16 }
 0xd3f   : > { %s2268_s29 = scalar_lea.sflag [#allocation6], %s4139_s20  ;;  %p3182_p7 = scmp.ne.s32.totalorder %s2281_s9, %s3181_s5 }
 0xd40   : > { %s3326_s14 = smov [#allocation10]  }
 0xd41   : > { %s3185_s17 = sshll.u32 %s3326_s14, 4  ;;  %s3186_s17 = int_to_ptr.vmem [resolvable:$false] %s3185_s17 }
 0xd42   : > { %p4140_p11 = scmp.ne.s32.totalorder %s4137_s21, 0  ;;  %s3187_s19 = scalar_lea.vmem %s3186_s17, 32 }
 0xd43   : > { %s3973_s6 = scalar_lea.hbm %s4138_s3, %s2644_s26  ;;  %p3188_p13 = scmp.lt.s32.totalorder %s2281_s9, %s3186_s17 }
 0xd44   : > { %p3183_p0 = pnand %p3182_p7, %p4140_p11  ;;  %p3189_p2 = scmp.lt.s32.totalorder %s3187_s19, %s3181_s5 }
 0xd46   : > { %p3184_p1 = pneg %p3183_p0  ;;  %p3190_p6 = por %p3189_p2, %p3188_p13 }
 0xd48   : > { %p3191_p9 = pnand %p3190_p6, %p3184_p1 }
 0xd4a   : > { %3194 = shalt.err (!%p3191_p9)
}
 0xd4b   : > { %s3195_s28 = scalar_lea.hbm %s3973_s6, 16  ;;  %s3199_s24 = scalar_lea.hbm %s4138_s3, 32 }
 0xd4c   : > { %p3196_p5 = scmp.ne.s32.totalorder %s3973_s6, %s3195_s28  ;;  %p3200_p10 = scmp.lt.u32.totalorder %s3973_s6, %s4138_s3 }
 0xd4d   : > { %p3201_p8 = scmp.lt.u32.totalorder %s3199_s24, %s3195_s28  ;;  %p3203_p7 = scmp.lt.u32.totalorder %s3195_s28, %s3973_s6 }
 0xd4e   : > { %p3197_p3 = pnand %p3196_p5, %p4140_p11 }
 0xd4f   : > { %p3202_p12 = por %p3201_p8, %p3200_p10 }
 0xd50   : > { %p3198_p4 = pneg %p3197_p3 }
 0xd51   : > { %p3204_p0 = por %p3203_p7, %p3202_p12 }
 0xd53   : > { %p3205_p1 = pnand %p3204_p0, %p3198_p4 }
 0xd55   : > { %3208 = shalt.err (!%p3205_p1)
}
 0xd56   : > { %2823 = dma.vmem_to_hbm [thread:$0]  (%p4140_p11), %s2281_s9, 16, %s3973_s6, %s2268_s29  }
 0xd57 PF: > { %s4141_s8 = sld [smem:[#allocation23_spill]]  ;;  %s4142_s18 = sld [smem:[#allocation17_spill]] }
 0xd58   : > { %s4143_s13 = sld [smem:[#allocation29_spill]] }
 0xd5d   : > { %p2840_p13 = scmp.ge.s32.totalorder %s4141_s8, 2  ;;  %s2292_s10 = sand.u32 1, %s4142_s18  }
 0xd5e   : > { %p4144_p2 = scmp.ne.s32.totalorder %s4143_s13, 0  ;;  %s2293_s4 = scalar_lea.sflag [#allocation6], %s2292_s10 }
 0xd60   : > { %p2836_p6 = pnand %p2840_p13, %p4144_p2 }
 0xd62   : > { %3264 = dma.done.wait (!%p2836_p6), %s2293_s4, 16  }
 0xd63   : > { %3266 = vsyncadd (!%p2836_p6), %s2293_s4, 4294967280  ;;  %s35_s0 = sadd.s32 1, %s4141_s8   ;;  %s4145_s23 = sld [smem:[#allocation18_spill]] }
 0xd64   : > { %p32_p9 = scmp.ge.s32.totalorder %s35_s0, 6   ;;  %s4146_s11 = sld [smem:[#allocation27_spill]] }
 0xd65   : > { %s4147_s24 = sld [smem:[#allocation19_spill]]  ;;  %s4148_s25 = sld [smem:[#allocation20_spill]] }
 0xd66   : > { %s4149_s26 = sld [smem:[#allocation26_spill]]  ;;  %s4150_s27 = sld [smem:[#allocation21_spill]] }
 0xd67   : > { %s4151_s28 = sld [smem:[#allocation22_spill]]  ;;  %s4152_s29 = sld [smem:[#allocation24_spill]] }
 0xd68   : > { %s4153_s30 = sld [smem:[#allocation25_spill]]  ;;  %s4154_s21 = smov %s3273_s22 }
 0xd69   : > { %s4155_s22 = smov %s4145_s23  ;;  %34 = sbr.rel (!%p32_p9) target bundleno = 28 (0x1c), region = 231 }
 0xd6a   : > { %s4156_s23 = smov %s4146_s11 }
 0xd70   :  { %2297 = vsyncpa [#allocation5], 1 }
 0xd71   :  { %2299 = vsyncpa [#allocation5 + $0x1], 1 }
 0xd72   :  { %2300 = vsyncpa [#allocation8], 1 }
 0xd73   :  { %2302 = vsyncpa [#allocation8 + $0x1], 1 }
 0xd74   :  { %2303 = vsyncpa [#allocation6], 1 }
 0xd75   :  { %2305 = vsyncpa [#allocation6 + $0x1], 1 }

</bundles_post_ra>
